<compile_context>
chip_gen: v6e
topology: v6e:2x2x1
jax: 0.10.0
libtpu: 0.0.40
codegen_flags: <defaults>
</compile_context>

<pallas_src>
import functools

import jax
import jax.numpy as jnp
from jax import lax
from jax.experimental import pallas as pl
from jax.experimental.pallas import tpu as pltpu


def _round_up(a, b):
    return (a + b - 1) // b * b


# -----------------------------------------------------------------------------
# Fused ResidualGroup kernel (one grid step = one batch sample, planar NCHW)
# -----------------------------------------------------------------------------
def _residual_group_kernel(x_ref, mask_ref, wrb_ref, brb_ref, wt_ref, bt_ref,
                           o_ref, xp, tp, p_scr, *,
                           n_resblocks, res_scale, H, W):
    # x_ref    : (1, C, H*W)           input sample, dense stride-W rows
    # mask_ref : (1, L) f32            1.0 on interior columns of the padded-flat
    #                                  layout, 0.0 on the halo columns
    # wrb_ref  : (2R, C, 9C) bf16      stacked resblock weights, (ky,kx,ci) rows
    # brb_ref  : (2R, C, 1)  f32       stacked resblock biases
    # wt_ref   : (C, 9C) bf16          tail conv weights
    # bt_ref   : (C, 1)  f32           tail conv bias
    # o_ref    : (1, C, H*W)           output sample
    # xp, tp   : (C, PAD_AL) f32       padded-flat running / intermediate acts
    # p_scr    : (9C, L) bf16          conv patches, reused across all layers
    C = x_ref.shape[1]
    Wp = W + 2                      # padded row stride
    L = H * Wp                      # conv output span in padded-flat coords
    PAD_AL = xp.shape[1]
    span = Wp + 1                   # start of the interior in padded-flat coords
    bot = (H + 1) * Wp              # start of the bottom halo row

    interior = mask_ref[...] != 0.0             # (1, L) bool, broadcast over C

    # ---- per-step init: zero the tiny halo strips only (column halos are kept
    # zero by the masked interior writes below; interiors are fully rewritten).
    top_z = jnp.zeros((C, Wp + 1), jnp.float32)
    bot_z = jnp.zeros((C, PAD_AL - bot), jnp.float32)
    xp[:, 0:Wp + 1] = top_z
    xp[:, bot:PAD_AL] = bot_z
    tp[:, 0:Wp + 1] = top_z
    tp[:, bot:PAD_AL] = bot_z

    # ---- load the group input (dense stride-W) into the padded interior
    x0 = x_ref[0].astype(jnp.float32)           # (C, H*W)
    col_z = jnp.zeros((C, 2), jnp.float32)
    for h in range(H):
        base = (h + 1) * Wp + 1
        xp[:, base:base + W] = x0[:, h * W:(h + 1) * W]
        xp[:, base + W:base + W + 2] = col_z    # right/left column halos

    def conv3x3(src_ref, wmat, bias):
        """'SAME' 3x3 conv over the padded-flat activation in src_ref.

        Column q = h*Wp + w of the (C, L) f32 result holds out[:, h, w] for
        w < W; columns with w in {W, W+1} are junk and must be masked before
        being written back (this is what keeps the zero halo alive)."""
        src = src_ref[...].astype(jnp.bfloat16)             # (C, PAD_AL)
        for tap in range(9):
            dy, dx = divmod(tap, 3)
            off = dy * Wp + dx
            p_scr[tap * C:(tap + 1) * C, :] = src[:, off:off + L]
        y = jnp.dot(wmat, p_scr[...], preferred_element_type=jnp.float32)
        return y + bias                                     # (C, L) + (C, 1)

    def resblock(i, carry):
        w1 = wrb_ref[2 * i]
        b1 = brb_ref[2 * i]
        w2 = wrb_ref[2 * i + 1]
        b2 = brb_ref[2 * i + 1]
        # t = relu(conv1(x))
        t = jnp.maximum(conv3x3(xp, w1, b1), 0.0)
        tp[:, span:span + L] = jnp.where(interior, t, 0.0)
        # x = 0.1 * conv2(t) + x   (f32 carry)
        y = conv3x3(tp, w2, b2)
        xcur = xp[...][:, span:span + L]
        xp[:, span:span + L] = jnp.where(
            interior, jnp.float32(res_scale) * y + xcur, 0.0)
        return carry

    lax.fori_loop(0, n_resblocks, resblock, 0)

    # ---- tail conv, group residual, store in dense stride-W layout
    y = conv3x3(xp, wt_ref[...], bt_ref[...])
    x0b = x_ref[0].astype(jnp.float32)
    for h in range(H):
        row = y[:, h * Wp:h * Wp + W] + x0b[:, h * W:(h + 1) * W]
        o_ref[0, :, h * W:(h + 1) * W] = row.astype(o_ref.dtype)


# -----------------------------------------------------------------------------
# Public forward (NCHW in / NCHW out, exactly like the PyTorch module)
# -----------------------------------------------------------------------------
def residual_group_forward(x_nchw, params, *, res_scale=0.1):
    """x_nchw: (N, C, H, W) float32 -> (N, C, H, W) float32."""
    N, C, H, W = x_nchw.shape
    R = len(params["resblocks"])
    HW = H * W
    Wp, Hp = W + 2, H + 2
    L = H * Wp
    PAD_AL = _round_up(Hp * Wp + 2, 128)

    # im2col-style weight flatten: rows ordered (ky, kx, ci) to match the
    # patches-scratch layout; cast to bf16 for the MXU (f32 accumulation).
    def flat_w(w):  # (Co, Ci, 3, 3) -> (Co, 9*Ci)
        co, ci = w.shape[0], w.shape[1]
        return jnp.transpose(w, (0, 2, 3, 1)).reshape(co, 9 * ci)

    w_list, b_list = [], []
    for (w1, b1, w2, b2) in params["resblocks"]:
        w_list += [flat_w(w1), flat_w(w2)]
        b_list += [b1.reshape(C, 1), b2.reshape(C, 1)]
    wrb = jnp.stack(w_list, axis=0).astype(jnp.bfloat16)     # (2R, C, 9C)
    brb = jnp.stack(b_list, axis=0).astype(jnp.float32)      # (2R, C, 1)
    wt = flat_w(params["tail_w"]).astype(jnp.bfloat16)       # (C, 9C)
    bt = params["tail_b"].reshape(C, 1).astype(jnp.float32)  # (C, 1)

    # Interior-column mask of the padded-flat layout (1 on w<W, 0 on halos).
    lane = jnp.arange(L, dtype=jnp.int32)
    interior_mask = ((lane % Wp) < W).astype(jnp.float32).reshape(1, L)

    # Free, contiguous reshape -> lane-dense (1, C, H*W) HBM-facing blocks.
    xr = x_nchw.reshape(N, C, HW)

    # Explicit VMEM budget (double-buffered I/O + weights, scratches, headroom).
    bytes_est = (
        2 * (C * HW * 4) * 2                                     # x + out blocks
        + 2 * (2 * R * C * 9 * C * 2 + 2 * R * C * 4
               + C * 9 * C * 2 + C * 4 + L * 4)                  # weights + mask
        + 2 * C * PAD_AL * 4 + 9 * C * L * 2)                    # scratches
    vmem_limit = int(max(32 << 20, min(64 << 20, 2 * bytes_est + (8 << 20))))

    kern = functools.partial(_residual_group_kernel,
                             n_resblocks=R, res_scale=res_scale, H=H, W=W)
    out = pl.pallas_call(
        kern,
        out_shape=jax.ShapeDtypeStruct((N, C, HW), x_nchw.dtype),
        grid=(N,),
        in_specs=[
            pl.BlockSpec((1, C, HW), lambda n: (n, 0, 0)),
            pl.BlockSpec((1, L), lambda n: (0, 0)),
            pl.BlockSpec((2 * R, C, 9 * C), lambda n: (0, 0, 0)),
            pl.BlockSpec((2 * R, C, 1), lambda n: (0, 0, 0)),
            pl.BlockSpec((C, 9 * C), lambda n: (0, 0)),
            pl.BlockSpec((C, 1), lambda n: (0, 0)),
        ],
        out_specs=pl.BlockSpec((1, C, HW), lambda n: (n, 0, 0)),
        scratch_shapes=[
            pltpu.VMEM((C, PAD_AL), jnp.float32),   # running activation (padded)
            pltpu.VMEM((C, PAD_AL), jnp.float32),   # intermediate act (padded)
            pltpu.VMEM((9 * C, L), jnp.bfloat16),   # conv patches (all layers)
        ],
        compiler_params=pltpu.CompilerParams(
            dimension_semantics=("parallel",),
            vmem_limit_bytes=vmem_limit),
    )(xr, interior_mask, wrb, brb, wt, bt)
    return out.reshape(N, C, H, W)


# -----------------------------------------------------------------------------
# Parameter init (PyTorch Conv2d-like uniform bounds), OIHW layout
# -----------------------------------------------------------------------------
def init_params(key, n_feat, n_resblocks):
    bound = 1.0 / ((n_feat * 9) ** 0.5)

    def conv_params(k):
        kw, kb = jax.random.split(k)
        w = jax.random.uniform(kw, (n_feat, n_feat, 3, 3), jnp.float32,
                               -bound, bound)
        b = jax.random.uniform(kb, (n_feat,), jnp.float32, -bound, bound)
        return w, b

    keys = jax.random.split(key, 2 * n_resblocks + 1)
    resblocks = []
    for i in range(n_resblocks):
        w1, b1 = conv_params(keys[2 * i])
        w2, b2 = conv_params(keys[2 * i + 1])
        resblocks.append((w1, b1, w2, b2))
    tail_w, tail_b = conv_params(keys[-1])
    return {"resblocks": resblocks, "tail_w": tail_w, "tail_b": tail_b}


# -----------------------------------------------------------------------------
# Pure-JAX references (for correctness checks), NCHW / OIHW throughout
# -----------------------------------------------------------------------------
def _conv_ref(x, w, b, cast_bf16):
    if cast_bf16:                       # mirror the kernel's bf16 MXU operands
        x = x.astype(jnp.bfloat16)
        w = w.astype(jnp.bfloat16)
    y = lax.conv_general_dilated(
        x, w, window_strides=(1, 1), padding="SAME",
        dimension_numbers=("NCHW", "OIHW", "NCHW"),
        preferred_element_type=jnp.float32)
    return y + b[None, :, None, None]


def residual_group_ref(x, params, cast_bf16=False):
    x0 = x
    h = x
    for (w1, b1, w2, b2) in params["resblocks"]:
        t = jnp.maximum(_conv_ref(h, w1, b1, cast_bf16), 0.0)
        h = 0.1 * _conv_ref(t, w2, b2, cast_bf16) + h
    return _conv_ref(h, params["tail_w"], params["tail_b"], cast_bf16) + x0


# -----------------------------------------------------------------------------
if __name__ == "__main__":
    n_feat = 4
    n_resblocks = 2
    N, H, W = 2, 16, 16

    key = jax.random.PRNGKey(0)
    k_x, k_p = jax.random.split(key)
    x = jax.random.normal(k_x, (N, n_feat, H, W), jnp.float32)   # NCHW
    params = init_params(k_p, n_feat, n_resblocks)

    forward = jax.jit(residual_group_forward)
    out = jax.block_until_ready(forward(x, params))
    assert out.shape == x.shape and out.dtype == x.dtype

    # Numerics-matched reference (bf16 conv operands, f32 accumulation/carry).
    ref_bf16 = residual_group_ref(x, params, cast_bf16=True)
    assert jnp.allclose(out, ref_bf16, rtol=2e-3, atol=2e-3), \
        "mismatch vs bf16-matched reference"
    # Full-precision module reference (looser tol: kernel uses bf16 MXU operands).
    ref_f32 = residual_group_ref(x, params, cast_bf16=False)
    assert jnp.allclose(out, ref_f32, rtol=5e-2, atol=5e-2), \
        "mismatch vs f32 reference"

    print("KERNEL_OK")
</pallas_src>

<mosaic_0001>
module attributes {stable_mosaic.version = 11 : i64} {
  func.func @_residual_group_kernel(%arg0: i32, %arg1: memref<1x4x256xf32, #tpu.memory_space<vmem>>, %arg2: memref<1x288xf32, #tpu.memory_space<vmem>>, %arg3: memref<4x4x36xbf16, #tpu.memory_space<vmem>>, %arg4: memref<4x4x1xf32, #tpu.memory_space<vmem>>, %arg5: memref<4x36xbf16, #tpu.memory_space<vmem>>, %arg6: memref<4x1xf32, #tpu.memory_space<vmem>>, %arg7: memref<1x4x256xf32, #tpu.memory_space<vmem>>, %arg8: memref<4x384xf32, #tpu.memory_space<vmem>>, %arg9: memref<4x384xf32, #tpu.memory_space<vmem>>, %arg10: memref<36x288xbf16, #tpu.memory_space<vmem>>) attributes {dimension_semantics = [#tpu.dimension_semantics<parallel>], iteration_bounds = array<i64: 2>, scalar_prefetch = 0 : i64, scratch_operands = 3 : i64, tpu.core_type = #tpu.core_type<tc>, window_params = [{transform_indices = @transform_0, window_bounds = array<i64: 1, 4, 256>}, {pipeline_mode = #tpu.pipeline_mode<synchronous>, transform_indices = @transform_1, window_bounds = array<i64: 1, 288>}, {pipeline_mode = #tpu.pipeline_mode<synchronous>, transform_indices = @transform_2, window_bounds = array<i64: 4, 4, 36>}, {pipeline_mode = #tpu.pipeline_mode<synchronous>, transform_indices = @transform_3, window_bounds = array<i64: 4, 4, 1>}, {pipeline_mode = #tpu.pipeline_mode<synchronous>, transform_indices = @transform_4, window_bounds = array<i64: 4, 36>}, {pipeline_mode = #tpu.pipeline_mode<synchronous>, transform_indices = @transform_5, window_bounds = array<i64: 4, 1>}, {transform_indices = @transform_6, window_bounds = array<i64: 1, 4, 256>}]} {
    %c0 = arith.constant 0 : index
    %c0_0 = arith.constant 0 : index
    %0 = vector.load %arg2[%c0, %c0_0] : memref<1x288xf32, #tpu.memory_space<vmem>>, vector<1x288xf32>
    %cst = arith.constant 0.000000e+00 : f32
    %1 = vector.broadcast %cst : f32 to vector<1x288xf32>
    %2 = arith.cmpf one, %0, %1 : vector<1x288xf32>
    %cst_1 = arith.constant 0.000000e+00 : f32
    %3 = vector.broadcast %cst_1 : f32 to vector<4x19xf32>
    %cst_2 = arith.constant 0.000000e+00 : f32
    %4 = vector.broadcast %cst_2 : f32 to vector<4x78xf32>
    %c0_3 = arith.constant 0 : index
    %c0_4 = arith.constant 0 : index
    %5 = vector.load %arg8[%c0_3, %c0_4] : memref<4x384xf32, #tpu.memory_space<vmem>>, vector<4x19xf32>
    tpu.vector_store %arg8[%c0_3, %c0_4], %3 {strides = array<i32>} : memref<4x384xf32, #tpu.memory_space<vmem>>, vector<4x19xf32>,
    %c0_5 = arith.constant 0 : index
    %c306 = arith.constant 306 : index
    %6 = vector.load %arg8[%c0_5, %c306] : memref<4x384xf32, #tpu.memory_space<vmem>>, vector<4x78xf32>
    tpu.vector_store %arg8[%c0_5, %c306], %4 {strides = array<i32>} : memref<4x384xf32, #tpu.memory_space<vmem>>, vector<4x78xf32>,
    %c0_6 = arith.constant 0 : index
    %c0_7 = arith.constant 0 : index
    %7 = vector.load %arg9[%c0_6, %c0_7] : memref<4x384xf32, #tpu.memory_space<vmem>>, vector<4x19xf32>
    tpu.vector_store %arg9[%c0_6, %c0_7], %3 {strides = array<i32>} : memref<4x384xf32, #tpu.memory_space<vmem>>, vector<4x19xf32>,
    %c0_8 = arith.constant 0 : index
    %c306_9 = arith.constant 306 : index
    %8 = vector.load %arg9[%c0_8, %c306_9] : memref<4x384xf32, #tpu.memory_space<vmem>>, vector<4x78xf32>
    tpu.vector_store %arg9[%c0_8, %c306_9], %4 {strides = array<i32>} : memref<4x384xf32, #tpu.memory_space<vmem>>, vector<4x78xf32>,
    %c0_10 = arith.constant 0 : index
    %c0_11 = arith.constant 0 : index
    %c0_12 = arith.constant 0 : index
    %9 = vector.load %arg1[%c0_10, %c0_11, %c0_12] : memref<1x4x256xf32, #tpu.memory_space<vmem>>, vector<1x4x256xf32>
    %10 = vector.shape_cast %9 : vector<1x4x256xf32> to vector<4x256xf32>
    %cst_13 = arith.constant 0.000000e+00 : f32
    %11 = vector.broadcast %cst_13 : f32 to vector<4x2xf32>
    %12 = vector.extract_strided_slice %10 {offsets = [0, 0], sizes = [4, 16], strides = [1, 1]} : vector<4x256xf32> to vector<4x16xf32>
    %c0_14 = arith.constant 0 : index
    %c19 = arith.constant 19 : index
    %13 = vector.load %arg8[%c0_14, %c19] : memref<4x384xf32, #tpu.memory_space<vmem>>, vector<4x16xf32>
    tpu.vector_store %arg8[%c0_14, %c19], %12 {strides = array<i32>} : memref<4x384xf32, #tpu.memory_space<vmem>>, vector<4x16xf32>,
    %c0_15 = arith.constant 0 : index
    %c35 = arith.constant 35 : index
    %14 = vector.load %arg8[%c0_15, %c35] : memref<4x384xf32, #tpu.memory_space<vmem>>, vector<4x2xf32>
    tpu.vector_store %arg8[%c0_15, %c35], %11 {strides = array<i32>} : memref<4x384xf32, #tpu.memory_space<vmem>>, vector<4x2xf32>,
    %15 = vector.extract_strided_slice %10 {offsets = [0, 16], sizes = [4, 16], strides = [1, 1]} : vector<4x256xf32> to vector<4x16xf32>
    %c0_16 = arith.constant 0 : index
    %c37 = arith.constant 37 : index
    %16 = vector.load %arg8[%c0_16, %c37] : memref<4x384xf32, #tpu.memory_space<vmem>>, vector<4x16xf32>
    tpu.vector_store %arg8[%c0_16, %c37], %15 {strides = array<i32>} : memref<4x384xf32, #tpu.memory_space<vmem>>, vector<4x16xf32>,
    %c0_17 = arith.constant 0 : index
    %c53 = arith.constant 53 : index
    %17 = vector.load %arg8[%c0_17, %c53] : memref<4x384xf32, #tpu.memory_space<vmem>>, vector<4x2xf32>
    tpu.vector_store %arg8[%c0_17, %c53], %11 {strides = array<i32>} : memref<4x384xf32, #tpu.memory_space<vmem>>, vector<4x2xf32>,
    %18 = vector.extract_strided_slice %10 {offsets = [0, 32], sizes = [4, 16], strides = [1, 1]} : vector<4x256xf32> to vector<4x16xf32>
    %c0_18 = arith.constant 0 : index
    %c55 = arith.constant 55 : index
    %19 = vector.load %arg8[%c0_18, %c55] : memref<4x384xf32, #tpu.memory_space<vmem>>, vector<4x16xf32>
    tpu.vector_store %arg8[%c0_18, %c55], %18 {strides = array<i32>} : memref<4x384xf32, #tpu.memory_space<vmem>>, vector<4x16xf32>,
    %c0_19 = arith.constant 0 : index
    %c71 = arith.constant 71 : index
    %20 = vector.load %arg8[%c0_19, %c71] : memref<4x384xf32, #tpu.memory_space<vmem>>, vector<4x2xf32>
    tpu.vector_store %arg8[%c0_19, %c71], %11 {strides = array<i32>} : memref<4x384xf32, #tpu.memory_space<vmem>>, vector<4x2xf32>,
    %21 = vector.extract_strided_slice %10 {offsets = [0, 48], sizes = [4, 16], strides = [1, 1]} : vector<4x256xf32> to vector<4x16xf32>
    %c0_20 = arith.constant 0 : index
    %c73 = arith.constant 73 : index
    %22 = vector.load %arg8[%c0_20, %c73] : memref<4x384xf32, #tpu.memory_space<vmem>>, vector<4x16xf32>
    tpu.vector_store %arg8[%c0_20, %c73], %21 {strides = array<i32>} : memref<4x384xf32, #tpu.memory_space<vmem>>, vector<4x16xf32>,
    %c0_21 = arith.constant 0 : index
    %c89 = arith.constant 89 : index
    %23 = vector.load %arg8[%c0_21, %c89] : memref<4x384xf32, #tpu.memory_space<vmem>>, vector<4x2xf32>
    tpu.vector_store %arg8[%c0_21, %c89], %11 {strides = array<i32>} : memref<4x384xf32, #tpu.memory_space<vmem>>, vector<4x2xf32>,
    %24 = vector.extract_strided_slice %10 {offsets = [0, 64], sizes = [4, 16], strides = [1, 1]} : vector<4x256xf32> to vector<4x16xf32>
    %c0_22 = arith.constant 0 : index
    %c91 = arith.constant 91 : index
    %25 = vector.load %arg8[%c0_22, %c91] : memref<4x384xf32, #tpu.memory_space<vmem>>, vector<4x16xf32>
    tpu.vector_store %arg8[%c0_22, %c91], %24 {strides = array<i32>} : memref<4x384xf32, #tpu.memory_space<vmem>>, vector<4x16xf32>,
    %c0_23 = arith.constant 0 : index
    %c107 = arith.constant 107 : index
    %26 = vector.load %arg8[%c0_23, %c107] : memref<4x384xf32, #tpu.memory_space<vmem>>, vector<4x2xf32>
    tpu.vector_store %arg8[%c0_23, %c107], %11 {strides = array<i32>} : memref<4x384xf32, #tpu.memory_space<vmem>>, vector<4x2xf32>,
    %27 = vector.extract_strided_slice %10 {offsets = [0, 80], sizes = [4, 16], strides = [1, 1]} : vector<4x256xf32> to vector<4x16xf32>
    %c0_24 = arith.constant 0 : index
    %c109 = arith.constant 109 : index
    %28 = vector.load %arg8[%c0_24, %c109] : memref<4x384xf32, #tpu.memory_space<vmem>>, vector<4x16xf32>
    tpu.vector_store %arg8[%c0_24, %c109], %27 {strides = array<i32>} : memref<4x384xf32, #tpu.memory_space<vmem>>, vector<4x16xf32>,
    %c0_25 = arith.constant 0 : index
    %c125 = arith.constant 125 : index
    %29 = vector.load %arg8[%c0_25, %c125] : memref<4x384xf32, #tpu.memory_space<vmem>>, vector<4x2xf32>
    tpu.vector_store %arg8[%c0_25, %c125], %11 {strides = array<i32>} : memref<4x384xf32, #tpu.memory_space<vmem>>, vector<4x2xf32>,
    %30 = vector.extract_strided_slice %10 {offsets = [0, 96], sizes = [4, 16], strides = [1, 1]} : vector<4x256xf32> to vector<4x16xf32>
    %c0_26 = arith.constant 0 : index
    %c127 = arith.constant 127 : index
    %31 = vector.load %arg8[%c0_26, %c127] : memref<4x384xf32, #tpu.memory_space<vmem>>, vector<4x16xf32>
    tpu.vector_store %arg8[%c0_26, %c127], %30 {strides = array<i32>} : memref<4x384xf32, #tpu.memory_space<vmem>>, vector<4x16xf32>,
    %c0_27 = arith.constant 0 : index
    %c143 = arith.constant 143 : index
    %32 = vector.load %arg8[%c0_27, %c143] : memref<4x384xf32, #tpu.memory_space<vmem>>, vector<4x2xf32>
    tpu.vector_store %arg8[%c0_27, %c143], %11 {strides = array<i32>} : memref<4x384xf32, #tpu.memory_space<vmem>>, vector<4x2xf32>,
    %33 = vector.extract_strided_slice %10 {offsets = [0, 112], sizes = [4, 16], strides = [1, 1]} : vector<4x256xf32> to vector<4x16xf32>
    %c0_28 = arith.constant 0 : index
    %c145 = arith.constant 145 : index
    %34 = vector.load %arg8[%c0_28, %c145] : memref<4x384xf32, #tpu.memory_space<vmem>>, vector<4x16xf32>
    tpu.vector_store %arg8[%c0_28, %c145], %33 {strides = array<i32>} : memref<4x384xf32, #tpu.memory_space<vmem>>, vector<4x16xf32>,
    %c0_29 = arith.constant 0 : index
    %c161 = arith.constant 161 : index
    %35 = vector.load %arg8[%c0_29, %c161] : memref<4x384xf32, #tpu.memory_space<vmem>>, vector<4x2xf32>
    tpu.vector_store %arg8[%c0_29, %c161], %11 {strides = array<i32>} : memref<4x384xf32, #tpu.memory_space<vmem>>, vector<4x2xf32>,
    %36 = vector.extract_strided_slice %10 {offsets = [0, 128], sizes = [4, 16], strides = [1, 1]} : vector<4x256xf32> to vector<4x16xf32>
    %c0_30 = arith.constant 0 : index
    %c163 = arith.constant 163 : index
    %37 = vector.load %arg8[%c0_30, %c163] : memref<4x384xf32, #tpu.memory_space<vmem>>, vector<4x16xf32>
    tpu.vector_store %arg8[%c0_30, %c163], %36 {strides = array<i32>} : memref<4x384xf32, #tpu.memory_space<vmem>>, vector<4x16xf32>,
    %c0_31 = arith.constant 0 : index
    %c179 = arith.constant 179 : index
    %38 = vector.load %arg8[%c0_31, %c179] : memref<4x384xf32, #tpu.memory_space<vmem>>, vector<4x2xf32>
    tpu.vector_store %arg8[%c0_31, %c179], %11 {strides = array<i32>} : memref<4x384xf32, #tpu.memory_space<vmem>>, vector<4x2xf32>,
    %39 = vector.extract_strided_slice %10 {offsets = [0, 144], sizes = [4, 16], strides = [1, 1]} : vector<4x256xf32> to vector<4x16xf32>
    %c0_32 = arith.constant 0 : index
    %c181 = arith.constant 181 : index
    %40 = vector.load %arg8[%c0_32, %c181] : memref<4x384xf32, #tpu.memory_space<vmem>>, vector<4x16xf32>
    tpu.vector_store %arg8[%c0_32, %c181], %39 {strides = array<i32>} : memref<4x384xf32, #tpu.memory_space<vmem>>, vector<4x16xf32>,
    %c0_33 = arith.constant 0 : index
    %c197 = arith.constant 197 : index
    %41 = vector.load %arg8[%c0_33, %c197] : memref<4x384xf32, #tpu.memory_space<vmem>>, vector<4x2xf32>
    tpu.vector_store %arg8[%c0_33, %c197], %11 {strides = array<i32>} : memref<4x384xf32, #tpu.memory_space<vmem>>, vector<4x2xf32>,
    %42 = vector.extract_strided_slice %10 {offsets = [0, 160], sizes = [4, 16], strides = [1, 1]} : vector<4x256xf32> to vector<4x16xf32>
    %c0_34 = arith.constant 0 : index
    %c199 = arith.constant 199 : index
    %43 = vector.load %arg8[%c0_34, %c199] : memref<4x384xf32, #tpu.memory_space<vmem>>, vector<4x16xf32>
    tpu.vector_store %arg8[%c0_34, %c199], %42 {strides = array<i32>} : memref<4x384xf32, #tpu.memory_space<vmem>>, vector<4x16xf32>,
    %c0_35 = arith.constant 0 : index
    %c215 = arith.constant 215 : index
    %44 = vector.load %arg8[%c0_35, %c215] : memref<4x384xf32, #tpu.memory_space<vmem>>, vector<4x2xf32>
    tpu.vector_store %arg8[%c0_35, %c215], %11 {strides = array<i32>} : memref<4x384xf32, #tpu.memory_space<vmem>>, vector<4x2xf32>,
    %45 = vector.extract_strided_slice %10 {offsets = [0, 176], sizes = [4, 16], strides = [1, 1]} : vector<4x256xf32> to vector<4x16xf32>
    %c0_36 = arith.constant 0 : index
    %c217 = arith.constant 217 : index
    %46 = vector.load %arg8[%c0_36, %c217] : memref<4x384xf32, #tpu.memory_space<vmem>>, vector<4x16xf32>
    tpu.vector_store %arg8[%c0_36, %c217], %45 {strides = array<i32>} : memref<4x384xf32, #tpu.memory_space<vmem>>, vector<4x16xf32>,
    %c0_37 = arith.constant 0 : index
    %c233 = arith.constant 233 : index
    %47 = vector.load %arg8[%c0_37, %c233] : memref<4x384xf32, #tpu.memory_space<vmem>>, vector<4x2xf32>
    tpu.vector_store %arg8[%c0_37, %c233], %11 {strides = array<i32>} : memref<4x384xf32, #tpu.memory_space<vmem>>, vector<4x2xf32>,
    %48 = vector.extract_strided_slice %10 {offsets = [0, 192], sizes = [4, 16], strides = [1, 1]} : vector<4x256xf32> to vector<4x16xf32>
    %c0_38 = arith.constant 0 : index
    %c235 = arith.constant 235 : index
    %49 = vector.load %arg8[%c0_38, %c235] : memref<4x384xf32, #tpu.memory_space<vmem>>, vector<4x16xf32>
    tpu.vector_store %arg8[%c0_38, %c235], %48 {strides = array<i32>} : memref<4x384xf32, #tpu.memory_space<vmem>>, vector<4x16xf32>,
    %c0_39 = arith.constant 0 : index
    %c251 = arith.constant 251 : index
    %50 = vector.load %arg8[%c0_39, %c251] : memref<4x384xf32, #tpu.memory_space<vmem>>, vector<4x2xf32>
    tpu.vector_store %arg8[%c0_39, %c251], %11 {strides = array<i32>} : memref<4x384xf32, #tpu.memory_space<vmem>>, vector<4x2xf32>,
    %51 = vector.extract_strided_slice %10 {offsets = [0, 208], sizes = [4, 16], strides = [1, 1]} : vector<4x256xf32> to vector<4x16xf32>
    %c0_40 = arith.constant 0 : index
    %c253 = arith.constant 253 : index
    %52 = vector.load %arg8[%c0_40, %c253] : memref<4x384xf32, #tpu.memory_space<vmem>>, vector<4x16xf32>
    tpu.vector_store %arg8[%c0_40, %c253], %51 {strides = array<i32>} : memref<4x384xf32, #tpu.memory_space<vmem>>, vector<4x16xf32>,
    %c0_41 = arith.constant 0 : index
    %c269 = arith.constant 269 : index
    %53 = vector.load %arg8[%c0_41, %c269] : memref<4x384xf32, #tpu.memory_space<vmem>>, vector<4x2xf32>
    tpu.vector_store %arg8[%c0_41, %c269], %11 {strides = array<i32>} : memref<4x384xf32, #tpu.memory_space<vmem>>, vector<4x2xf32>,
    %54 = vector.extract_strided_slice %10 {offsets = [0, 224], sizes = [4, 16], strides = [1, 1]} : vector<4x256xf32> to vector<4x16xf32>
    %c0_42 = arith.constant 0 : index
    %c271 = arith.constant 271 : index
    %55 = vector.load %arg8[%c0_42, %c271] : memref<4x384xf32, #tpu.memory_space<vmem>>, vector<4x16xf32>
    tpu.vector_store %arg8[%c0_42, %c271], %54 {strides = array<i32>} : memref<4x384xf32, #tpu.memory_space<vmem>>, vector<4x16xf32>,
    %c0_43 = arith.constant 0 : index
    %c287 = arith.constant 287 : index
    %56 = vector.load %arg8[%c0_43, %c287] : memref<4x384xf32, #tpu.memory_space<vmem>>, vector<4x2xf32>
    tpu.vector_store %arg8[%c0_43, %c287], %11 {strides = array<i32>} : memref<4x384xf32, #tpu.memory_space<vmem>>, vector<4x2xf32>,
    %57 = vector.extract_strided_slice %10 {offsets = [0, 240], sizes = [4, 16], strides = [1, 1]} : vector<4x256xf32> to vector<4x16xf32>
    %c0_44 = arith.constant 0 : index
    %c289 = arith.constant 289 : index
    %58 = vector.load %arg8[%c0_44, %c289] : memref<4x384xf32, #tpu.memory_space<vmem>>, vector<4x16xf32>
    tpu.vector_store %arg8[%c0_44, %c289], %57 {strides = array<i32>} : memref<4x384xf32, #tpu.memory_space<vmem>>, vector<4x16xf32>,
    %c0_45 = arith.constant 0 : index
    %c305 = arith.constant 305 : index
    %59 = vector.load %arg8[%c0_45, %c305] : memref<4x384xf32, #tpu.memory_space<vmem>>, vector<4x2xf32>
    tpu.vector_store %arg8[%c0_45, %c305], %11 {strides = array<i32>} : memref<4x384xf32, #tpu.memory_space<vmem>>, vector<4x2xf32>,
    %c0_i32 = arith.constant 0 : i32
    %c2_i32 = arith.constant 2 : i32
    %60 = arith.addi %c0_i32, %c2_i32 : i32
    %c1_i32 = arith.constant 1 : i32
    scf.for %arg11 = %c0_i32 to %60 step %c1_i32  : i32 {
      %c2_i32_104 = arith.constant 2 : i32
      %185 = arith.muli %c2_i32_104, %arg11 : i32
      %186 = arith.index_cast %185 : i32 to index
      %c0_105 = arith.constant 0 : index
      %c0_106 = arith.constant 0 : index
      %187 = vector.load %arg3[%186, %c0_105, %c0_106] : memref<4x4x36xbf16, #tpu.memory_space<vmem>>, vector<1x4x36xbf16>
      %188 = vector.shape_cast %187 : vector<1x4x36xbf16> to vector<4x36xbf16>
      %c2_i32_107 = arith.constant 2 : i32
      %189 = arith.muli %c2_i32_107, %arg11 : i32
      %190 = arith.index_cast %189 : i32 to index
      %c0_108 = arith.constant 0 : index
      %c0_109 = arith.constant 0 : index
      %191 = vector.load %arg4[%190, %c0_108, %c0_109] : memref<4x4x1xf32, #tpu.memory_space<vmem>>, vector<1x4x1xf32>
      %192 = vector.shape_cast %191 : vector<1x4x1xf32> to vector<4x1xf32>
      %c2_i32_110 = arith.constant 2 : i32
      %193 = arith.muli %c2_i32_110, %arg11 : i32
      %c1_i32_111 = arith.constant 1 : i32
      %194 = arith.addi %193, %c1_i32_111 : i32
      %195 = arith.index_cast %194 : i32 to index
      %c0_112 = arith.constant 0 : index
      %c0_113 = arith.constant 0 : index
      %196 = vector.load %arg3[%195, %c0_112, %c0_113] : memref<4x4x36xbf16, #tpu.memory_space<vmem>>, vector<1x4x36xbf16>
      %197 = vector.shape_cast %196 : vector<1x4x36xbf16> to vector<4x36xbf16>
      %c2_i32_114 = arith.constant 2 : i32
      %198 = arith.muli %c2_i32_114, %arg11 : i32
      %c1_i32_115 = arith.constant 1 : i32
      %199 = arith.addi %198, %c1_i32_115 : i32
      %200 = arith.index_cast %199 : i32 to index
      %c0_116 = arith.constant 0 : index
      %c0_117 = arith.constant 0 : index
      %201 = vector.load %arg4[%200, %c0_116, %c0_117] : memref<4x4x1xf32, #tpu.memory_space<vmem>>, vector<1x4x1xf32>
      %202 = vector.shape_cast %201 : vector<1x4x1xf32> to vector<4x1xf32>
      %c0_118 = arith.constant 0 : index
      %c0_119 = arith.constant 0 : index
      %203 = vector.load %arg8[%c0_118, %c0_119] : memref<4x384xf32, #tpu.memory_space<vmem>>, vector<4x384xf32>
      %204 = arith.truncf %203 : vector<4x384xf32> to vector<4x384xbf16>
      %205 = vector.extract_strided_slice %204 {offsets = [0, 0], sizes = [4, 288], strides = [1, 1]} : vector<4x384xbf16> to vector<4x288xbf16>
      %c0_120 = arith.constant 0 : index
      %c0_121 = arith.constant 0 : index
      %206 = vector.load %arg10[%c0_120, %c0_121] : memref<36x288xbf16, #tpu.memory_space<vmem>>, vector<4x288xbf16>
      tpu.vector_store %arg10[%c0_120, %c0_121], %205 {strides = array<i32>} : memref<36x288xbf16, #tpu.memory_space<vmem>>, vector<4x288xbf16>,
      %207 = vector.extract_strided_slice %204 {offsets = [0, 1], sizes = [4, 288], strides = [1, 1]} : vector<4x384xbf16> to vector<4x288xbf16>
      %c4_122 = arith.constant 4 : index
      %c0_123 = arith.constant 0 : index
      %208 = vector.load %arg10[%c4_122, %c0_123] : memref<36x288xbf16, #tpu.memory_space<vmem>>, vector<4x288xbf16>
      tpu.vector_store %arg10[%c4_122, %c0_123], %207 {strides = array<i32>} : memref<36x288xbf16, #tpu.memory_space<vmem>>, vector<4x288xbf16>,
      %209 = vector.extract_strided_slice %204 {offsets = [0, 2], sizes = [4, 288], strides = [1, 1]} : vector<4x384xbf16> to vector<4x288xbf16>
      %c8_124 = arith.constant 8 : index
      %c0_125 = arith.constant 0 : index
      %210 = vector.load %arg10[%c8_124, %c0_125] : memref<36x288xbf16, #tpu.memory_space<vmem>>, vector<4x288xbf16>
      tpu.vector_store %arg10[%c8_124, %c0_125], %209 {strides = array<i32>} : memref<36x288xbf16, #tpu.memory_space<vmem>>, vector<4x288xbf16>,
      %211 = vector.extract_strided_slice %204 {offsets = [0, 18], sizes = [4, 288], strides = [1, 1]} : vector<4x384xbf16> to vector<4x288xbf16>
      %c12_126 = arith.constant 12 : index
      %c0_127 = arith.constant 0 : index
      %212 = vector.load %arg10[%c12_126, %c0_127] : memref<36x288xbf16, #tpu.memory_space<vmem>>, vector<4x288xbf16>
      tpu.vector_store %arg10[%c12_126, %c0_127], %211 {strides = array<i32>} : memref<36x288xbf16, #tpu.memory_space<vmem>>, vector<4x288xbf16>,
      %213 = vector.extract_strided_slice %204 {offsets = [0, 19], sizes = [4, 288], strides = [1, 1]} : vector<4x384xbf16> to vector<4x288xbf16>
      %c16_128 = arith.constant 16 : index
      %c0_129 = arith.constant 0 : index
      %214 = vector.load %arg10[%c16_128, %c0_129] : memref<36x288xbf16, #tpu.memory_space<vmem>>, vector<4x288xbf16>
      tpu.vector_store %arg10[%c16_128, %c0_129], %213 {strides = array<i32>} : memref<36x288xbf16, #tpu.memory_space<vmem>>, vector<4x288xbf16>,
      %215 = vector.extract_strided_slice %204 {offsets = [0, 20], sizes = [4, 288], strides = [1, 1]} : vector<4x384xbf16> to vector<4x288xbf16>
      %c20_130 = arith.constant 20 : index
      %c0_131 = arith.constant 0 : index
      %216 = vector.load %arg10[%c20_130, %c0_131] : memref<36x288xbf16, #tpu.memory_space<vmem>>, vector<4x288xbf16>
      tpu.vector_store %arg10[%c20_130, %c0_131], %215 {strides = array<i32>} : memref<36x288xbf16, #tpu.memory_space<vmem>>, vector<4x288xbf16>,
      %217 = vector.extract_strided_slice %204 {offsets = [0, 36], sizes = [4, 288], strides = [1, 1]} : vector<4x384xbf16> to vector<4x288xbf16>
      %c24_132 = arith.constant 24 : index
      %c0_133 = arith.constant 0 : index
      %218 = vector.load %arg10[%c24_132, %c0_133] : memref<36x288xbf16, #tpu.memory_space<vmem>>, vector<4x288xbf16>
      tpu.vector_store %arg10[%c24_132, %c0_133], %217 {strides = array<i32>} : memref<36x288xbf16, #tpu.memory_space<vmem>>, vector<4x288xbf16>,
      %219 = vector.extract_strided_slice %204 {offsets = [0, 37], sizes = [4, 288], strides = [1, 1]} : vector<4x384xbf16> to vector<4x288xbf16>
      %c28_134 = arith.constant 28 : index
      %c0_135 = arith.constant 0 : index
      %220 = vector.load %arg10[%c28_134, %c0_135] : memref<36x288xbf16, #tpu.memory_space<vmem>>, vector<4x288xbf16>
      tpu.vector_store %arg10[%c28_134, %c0_135], %219 {strides = array<i32>} : memref<36x288xbf16, #tpu.memory_space<vmem>>, vector<4x288xbf16>,
      %221 = vector.extract_strided_slice %204 {offsets = [0, 38], sizes = [4, 288], strides = [1, 1]} : vector<4x384xbf16> to vector<4x288xbf16>
      %c32_136 = arith.constant 32 : index
      %c0_137 = arith.constant 0 : index
      %222 = vector.load %arg10[%c32_136, %c0_137] : memref<36x288xbf16, #tpu.memory_space<vmem>>, vector<4x288xbf16>
      tpu.vector_store %arg10[%c32_136, %c0_137], %221 {strides = array<i32>} : memref<36x288xbf16, #tpu.memory_space<vmem>>, vector<4x288xbf16>,
      %c0_138 = arith.constant 0 : index
      %c0_139 = arith.constant 0 : index
      %223 = vector.load %arg10[%c0_138, %c0_139] : memref<36x288xbf16, #tpu.memory_space<vmem>>, vector<36x288xbf16>
      %cst_140 = arith.constant dense<0.000000e+00> : vector<4x288xf32>
      %224 = tpu.matmul %188, %223, %cst_140 {dimension_numbers = #tpu.dot_dimension_numbers<[1], [0], [0], [1], [0, 0, 1, 1], [], []>} : vector<4x36xbf16>, vector<36x288xbf16>, vector<4x288xf32> -> vector<4x288xf32>
      %225 = vector.broadcast %192 : vector<4x1xf32> to vector<4x288xf32>
      %226 = arith.addf %224, %225 : vector<4x288xf32>
      %cst_141 = arith.constant 0.000000e+00 : f32
      %227 = vector.broadcast %cst_141 : f32 to vector<4x288xf32>
      %228 = arith.maximumf %226, %227 : vector<4x288xf32>
      %cst_142 = arith.constant 0.000000e+00 : f32
      %229 = vector.shape_cast %2 : vector<1x288xi1> to vector<1x288xi1>
      %230 = vector.broadcast %229 : vector<1x288xi1> to vector<4x288xi1>
      %231 = vector.broadcast %cst_142 : f32 to vector<4x288xf32>
      %232 = arith.select %230, %228, %231 : vector<4x288xi1>, vector<4x288xf32>
      %c0_143 = arith.constant 0 : index
      %c19_144 = arith.constant 19 : index
      %233 = vector.load %arg9[%c0_143, %c19_144] : memref<4x384xf32, #tpu.memory_space<vmem>>, vector<4x288xf32>
      tpu.vector_store %arg9[%c0_143, %c19_144], %232 {strides = array<i32>} : memref<4x384xf32, #tpu.memory_space<vmem>>, vector<4x288xf32>,
      %c0_145 = arith.constant 0 : index
      %c0_146 = arith.constant 0 : index
      %234 = vector.load %arg9[%c0_145, %c0_146] : memref<4x384xf32, #tpu.memory_space<vmem>>, vector<4x384xf32>
      %235 = arith.truncf %234 : vector<4x384xf32> to vector<4x384xbf16>
      %236 = vector.extract_strided_slice %235 {offsets = [0, 0], sizes = [4, 288], strides = [1, 1]} : vector<4x384xbf16> to vector<4x288xbf16>
      %c0_147 = arith.constant 0 : index
      %c0_148 = arith.constant 0 : index
      %237 = vector.load %arg10[%c0_147, %c0_148] : memref<36x288xbf16, #tpu.memory_space<vmem>>, vector<4x288xbf16>
      tpu.vector_store %arg10[%c0_147, %c0_148], %236 {strides = array<i32>} : memref<36x288xbf16, #tpu.memory_space<vmem>>, vector<4x288xbf16>,
      %238 = vector.extract_strided_slice %235 {offsets = [0, 1], sizes = [4, 288], strides = [1, 1]} : vector<4x384xbf16> to vector<4x288xbf16>
      %c4_149 = arith.constant 4 : index
      %c0_150 = arith.constant 0 : index
      %239 = vector.load %arg10[%c4_149, %c0_150] : memref<36x288xbf16, #tpu.memory_space<vmem>>, vector<4x288xbf16>
      tpu.vector_store %arg10[%c4_149, %c0_150], %238 {strides = array<i32>} : memref<36x288xbf16, #tpu.memory_space<vmem>>, vector<4x288xbf16>,
      %240 = vector.extract_strided_slice %235 {offsets = [0, 2], sizes = [4, 288], strides = [1, 1]} : vector<4x384xbf16> to vector<4x288xbf16>
      %c8_151 = arith.constant 8 : index
      %c0_152 = arith.constant 0 : index
      %241 = vector.load %arg10[%c8_151, %c0_152] : memref<36x288xbf16, #tpu.memory_space<vmem>>, vector<4x288xbf16>
      tpu.vector_store %arg10[%c8_151, %c0_152], %240 {strides = array<i32>} : memref<36x288xbf16, #tpu.memory_space<vmem>>, vector<4x288xbf16>,
      %242 = vector.extract_strided_slice %235 {offsets = [0, 18], sizes = [4, 288], strides = [1, 1]} : vector<4x384xbf16> to vector<4x288xbf16>
      %c12_153 = arith.constant 12 : index
      %c0_154 = arith.constant 0 : index
      %243 = vector.load %arg10[%c12_153, %c0_154] : memref<36x288xbf16, #tpu.memory_space<vmem>>, vector<4x288xbf16>
      tpu.vector_store %arg10[%c12_153, %c0_154], %242 {strides = array<i32>} : memref<36x288xbf16, #tpu.memory_space<vmem>>, vector<4x288xbf16>,
      %244 = vector.extract_strided_slice %235 {offsets = [0, 19], sizes = [4, 288], strides = [1, 1]} : vector<4x384xbf16> to vector<4x288xbf16>
      %c16_155 = arith.constant 16 : index
      %c0_156 = arith.constant 0 : index
      %245 = vector.load %arg10[%c16_155, %c0_156] : memref<36x288xbf16, #tpu.memory_space<vmem>>, vector<4x288xbf16>
      tpu.vector_store %arg10[%c16_155, %c0_156], %244 {strides = array<i32>} : memref<36x288xbf16, #tpu.memory_space<vmem>>, vector<4x288xbf16>,
      %246 = vector.extract_strided_slice %235 {offsets = [0, 20], sizes = [4, 288], strides = [1, 1]} : vector<4x384xbf16> to vector<4x288xbf16>
      %c20_157 = arith.constant 20 : index
      %c0_158 = arith.constant 0 : index
      %247 = vector.load %arg10[%c20_157, %c0_158] : memref<36x288xbf16, #tpu.memory_space<vmem>>, vector<4x288xbf16>
      tpu.vector_store %arg10[%c20_157, %c0_158], %246 {strides = array<i32>} : memref<36x288xbf16, #tpu.memory_space<vmem>>, vector<4x288xbf16>,
      %248 = vector.extract_strided_slice %235 {offsets = [0, 36], sizes = [4, 288], strides = [1, 1]} : vector<4x384xbf16> to vector<4x288xbf16>
      %c24_159 = arith.constant 24 : index
      %c0_160 = arith.constant 0 : index
      %249 = vector.load %arg10[%c24_159, %c0_160] : memref<36x288xbf16, #tpu.memory_space<vmem>>, vector<4x288xbf16>
      tpu.vector_store %arg10[%c24_159, %c0_160], %248 {strides = array<i32>} : memref<36x288xbf16, #tpu.memory_space<vmem>>, vector<4x288xbf16>,
      %250 = vector.extract_strided_slice %235 {offsets = [0, 37], sizes = [4, 288], strides = [1, 1]} : vector<4x384xbf16> to vector<4x288xbf16>
      %c28_161 = arith.constant 28 : index
      %c0_162 = arith.constant 0 : index
      %251 = vector.load %arg10[%c28_161, %c0_162] : memref<36x288xbf16, #tpu.memory_space<vmem>>, vector<4x288xbf16>
      tpu.vector_store %arg10[%c28_161, %c0_162], %250 {strides = array<i32>} : memref<36x288xbf16, #tpu.memory_space<vmem>>, vector<4x288xbf16>,
      %252 = vector.extract_strided_slice %235 {offsets = [0, 38], sizes = [4, 288], strides = [1, 1]} : vector<4x384xbf16> to vector<4x288xbf16>
      %c32_163 = arith.constant 32 : index
      %c0_164 = arith.constant 0 : index
      %253 = vector.load %arg10[%c32_163, %c0_164] : memref<36x288xbf16, #tpu.memory_space<vmem>>, vector<4x288xbf16>
      tpu.vector_store %arg10[%c32_163, %c0_164], %252 {strides = array<i32>} : memref<36x288xbf16, #tpu.memory_space<vmem>>, vector<4x288xbf16>,
      %c0_165 = arith.constant 0 : index
      %c0_166 = arith.constant 0 : index
      %254 = vector.load %arg10[%c0_165, %c0_166] : memref<36x288xbf16, #tpu.memory_space<vmem>>, vector<36x288xbf16>
      %cst_167 = arith.constant dense<0.000000e+00> : vector<4x288xf32>
      %255 = tpu.matmul %197, %254, %cst_167 {dimension_numbers = #tpu.dot_dimension_numbers<[1], [0], [0], [1], [0, 0, 1, 1], [], []>} : vector<4x36xbf16>, vector<36x288xbf16>, vector<4x288xf32> -> vector<4x288xf32>
      %256 = vector.broadcast %202 : vector<4x1xf32> to vector<4x288xf32>
      %257 = arith.addf %255, %256 : vector<4x288xf32>
      %c0_168 = arith.constant 0 : index
      %c0_169 = arith.constant 0 : index
      %258 = vector.load %arg8[%c0_168, %c0_169] : memref<4x384xf32, #tpu.memory_space<vmem>>, vector<4x384xf32>
      %259 = vector.extract_strided_slice %258 {offsets = [0, 19], sizes = [4, 288], strides = [1, 1]} : vector<4x384xf32> to vector<4x288xf32>
      %cst_170 = arith.constant 1.000000e-01 : f32
      %260 = vector.broadcast %cst_170 : f32 to vector<4x288xf32>
      %261 = arith.mulf %260, %257 : vector<4x288xf32>
      %262 = arith.addf %261, %259 : vector<4x288xf32>
      %cst_171 = arith.constant 0.000000e+00 : f32
      %263 = vector.shape_cast %2 : vector<1x288xi1> to vector<1x288xi1>
      %264 = vector.broadcast %263 : vector<1x288xi1> to vector<4x288xi1>
      %265 = vector.broadcast %cst_171 : f32 to vector<4x288xf32>
      %266 = arith.select %264, %262, %265 : vector<4x288xi1>, vector<4x288xf32>
      %c0_172 = arith.constant 0 : index
      %c19_173 = arith.constant 19 : index
      %267 = vector.load %arg8[%c0_172, %c19_173] : memref<4x384xf32, #tpu.memory_space<vmem>>, vector<4x288xf32>
      tpu.vector_store %arg8[%c0_172, %c19_173], %266 {strides = array<i32>} : memref<4x384xf32, #tpu.memory_space<vmem>>, vector<4x288xf32>,
    }
    %c2_i32_46 = arith.constant 2 : i32
    %c0_47 = arith.constant 0 : index
    %c0_48 = arith.constant 0 : index
    %61 = vector.load %arg5[%c0_47, %c0_48] : memref<4x36xbf16, #tpu.memory_space<vmem>>, vector<4x36xbf16>
    %c0_49 = arith.constant 0 : index
    %c0_50 = arith.constant 0 : index
    %62 = vector.load %arg6[%c0_49, %c0_50] : memref<4x1xf32, #tpu.memory_space<vmem>>, vector<4x1xf32>
    %c0_51 = arith.constant 0 : index
    %c0_52 = arith.constant 0 : index
    %63 = vector.load %arg8[%c0_51, %c0_52] : memref<4x384xf32, #tpu.memory_space<vmem>>, vector<4x384xf32>
    %64 = arith.truncf %63 : vector<4x384xf32> to vector<4x384xbf16>
    %65 = vector.extract_strided_slice %64 {offsets = [0, 0], sizes = [4, 288], strides = [1, 1]} : vector<4x384xbf16> to vector<4x288xbf16>
    %c0_53 = arith.constant 0 : index
    %c0_54 = arith.constant 0 : index
    %66 = vector.load %arg10[%c0_53, %c0_54] : memref<36x288xbf16, #tpu.memory_space<vmem>>, vector<4x288xbf16>
    tpu.vector_store %arg10[%c0_53, %c0_54], %65 {strides = array<i32>} : memref<36x288xbf16, #tpu.memory_space<vmem>>, vector<4x288xbf16>,
    %67 = vector.extract_strided_slice %64 {offsets = [0, 1], sizes = [4, 288], strides = [1, 1]} : vector<4x384xbf16> to vector<4x288xbf16>
    %c4 = arith.constant 4 : index
    %c0_55 = arith.constant 0 : index
    %68 = vector.load %arg10[%c4, %c0_55] : memref<36x288xbf16, #tpu.memory_space<vmem>>, vector<4x288xbf16>
    tpu.vector_store %arg10[%c4, %c0_55], %67 {strides = array<i32>} : memref<36x288xbf16, #tpu.memory_space<vmem>>, vector<4x288xbf16>,
    %69 = vector.extract_strided_slice %64 {offsets = [0, 2], sizes = [4, 288], strides = [1, 1]} : vector<4x384xbf16> to vector<4x288xbf16>
    %c8 = arith.constant 8 : index
    %c0_56 = arith.constant 0 : index
    %70 = vector.load %arg10[%c8, %c0_56] : memref<36x288xbf16, #tpu.memory_space<vmem>>, vector<4x288xbf16>
    tpu.vector_store %arg10[%c8, %c0_56], %69 {strides = array<i32>} : memref<36x288xbf16, #tpu.memory_space<vmem>>, vector<4x288xbf16>,
    %71 = vector.extract_strided_slice %64 {offsets = [0, 18], sizes = [4, 288], strides = [1, 1]} : vector<4x384xbf16> to vector<4x288xbf16>
    %c12 = arith.constant 12 : index
    %c0_57 = arith.constant 0 : index
    %72 = vector.load %arg10[%c12, %c0_57] : memref<36x288xbf16, #tpu.memory_space<vmem>>, vector<4x288xbf16>
    tpu.vector_store %arg10[%c12, %c0_57], %71 {strides = array<i32>} : memref<36x288xbf16, #tpu.memory_space<vmem>>, vector<4x288xbf16>,
    %73 = vector.extract_strided_slice %64 {offsets = [0, 19], sizes = [4, 288], strides = [1, 1]} : vector<4x384xbf16> to vector<4x288xbf16>
    %c16 = arith.constant 16 : index
    %c0_58 = arith.constant 0 : index
    %74 = vector.load %arg10[%c16, %c0_58] : memref<36x288xbf16, #tpu.memory_space<vmem>>, vector<4x288xbf16>
    tpu.vector_store %arg10[%c16, %c0_58], %73 {strides = array<i32>} : memref<36x288xbf16, #tpu.memory_space<vmem>>, vector<4x288xbf16>,
    %75 = vector.extract_strided_slice %64 {offsets = [0, 20], sizes = [4, 288], strides = [1, 1]} : vector<4x384xbf16> to vector<4x288xbf16>
    %c20 = arith.constant 20 : index
    %c0_59 = arith.constant 0 : index
    %76 = vector.load %arg10[%c20, %c0_59] : memref<36x288xbf16, #tpu.memory_space<vmem>>, vector<4x288xbf16>
    tpu.vector_store %arg10[%c20, %c0_59], %75 {strides = array<i32>} : memref<36x288xbf16, #tpu.memory_space<vmem>>, vector<4x288xbf16>,
    %77 = vector.extract_strided_slice %64 {offsets = [0, 36], sizes = [4, 288], strides = [1, 1]} : vector<4x384xbf16> to vector<4x288xbf16>
    %c24 = arith.constant 24 : index
    %c0_60 = arith.constant 0 : index
    %78 = vector.load %arg10[%c24, %c0_60] : memref<36x288xbf16, #tpu.memory_space<vmem>>, vector<4x288xbf16>
    tpu.vector_store %arg10[%c24, %c0_60], %77 {strides = array<i32>} : memref<36x288xbf16, #tpu.memory_space<vmem>>, vector<4x288xbf16>,
    %79 = vector.extract_strided_slice %64 {offsets = [0, 37], sizes = [4, 288], strides = [1, 1]} : vector<4x384xbf16> to vector<4x288xbf16>
    %c28 = arith.constant 28 : index
    %c0_61 = arith.constant 0 : index
    %80 = vector.load %arg10[%c28, %c0_61] : memref<36x288xbf16, #tpu.memory_space<vmem>>, vector<4x288xbf16>
    tpu.vector_store %arg10[%c28, %c0_61], %79 {strides = array<i32>} : memref<36x288xbf16, #tpu.memory_space<vmem>>, vector<4x288xbf16>,
    %81 = vector.extract_strided_slice %64 {offsets = [0, 38], sizes = [4, 288], strides = [1, 1]} : vector<4x384xbf16> to vector<4x288xbf16>
    %c32 = arith.constant 32 : index
    %c0_62 = arith.constant 0 : index
    %82 = vector.load %arg10[%c32, %c0_62] : memref<36x288xbf16, #tpu.memory_space<vmem>>, vector<4x288xbf16>
    tpu.vector_store %arg10[%c32, %c0_62], %81 {strides = array<i32>} : memref<36x288xbf16, #tpu.memory_space<vmem>>, vector<4x288xbf16>,
    %c0_63 = arith.constant 0 : index
    %c0_64 = arith.constant 0 : index
    %83 = vector.load %arg10[%c0_63, %c0_64] : memref<36x288xbf16, #tpu.memory_space<vmem>>, vector<36x288xbf16>
    %cst_65 = arith.constant dense<0.000000e+00> : vector<4x288xf32>
    %84 = tpu.matmul %61, %83, %cst_65 {dimension_numbers = #tpu.dot_dimension_numbers<[1], [0], [0], [1], [0, 0, 1, 1], [], []>} : vector<4x36xbf16>, vector<36x288xbf16>, vector<4x288xf32> -> vector<4x288xf32>
    %85 = vector.broadcast %62 : vector<4x1xf32> to vector<4x288xf32>
    %86 = arith.addf %84, %85 : vector<4x288xf32>
    %c0_66 = arith.constant 0 : index
    %c0_67 = arith.constant 0 : index
    %c0_68 = arith.constant 0 : index
    %87 = vector.load %arg1[%c0_66, %c0_67, %c0_68] : memref<1x4x256xf32, #tpu.memory_space<vmem>>, vector<1x4x256xf32>
    %88 = vector.shape_cast %87 : vector<1x4x256xf32> to vector<4x256xf32>
    %89 = vector.extract_strided_slice %86 {offsets = [0, 0], sizes = [4, 16], strides = [1, 1]} : vector<4x288xf32> to vector<4x16xf32>
    %90 = vector.extract_strided_slice %88 {offsets = [0, 0], sizes = [4, 16], strides = [1, 1]} : vector<4x256xf32> to vector<4x16xf32>
    %91 = arith.addf %89, %90 : vector<4x16xf32>
    %c0_69 = arith.constant 0 : index
    %c0_70 = arith.constant 0 : index
    %c0_71 = arith.constant 0 : index
    %92 = vector.load %arg7[%c0_69, %c0_70, %c0_71] : memref<1x4x256xf32, #tpu.memory_space<vmem>>, vector<1x4x16xf32>
    %93 = vector.shape_cast %92 : vector<1x4x16xf32> to vector<4x16xf32>
    %94 = vector.shape_cast %91 : vector<4x16xf32> to vector<1x4x16xf32>
    tpu.vector_store %arg7[%c0_69, %c0_70, %c0_71], %94 {strides = array<i32>} : memref<1x4x256xf32, #tpu.memory_space<vmem>>, vector<1x4x16xf32>,
    %95 = vector.extract_strided_slice %86 {offsets = [0, 18], sizes = [4, 16], strides = [1, 1]} : vector<4x288xf32> to vector<4x16xf32>
    %96 = vector.extract_strided_slice %88 {offsets = [0, 16], sizes = [4, 16], strides = [1, 1]} : vector<4x256xf32> to vector<4x16xf32>
    %97 = arith.addf %95, %96 : vector<4x16xf32>
    %c0_72 = arith.constant 0 : index
    %c0_73 = arith.constant 0 : index
    %c16_74 = arith.constant 16 : index
    %98 = vector.load %arg7[%c0_72, %c0_73, %c16_74] : memref<1x4x256xf32, #tpu.memory_space<vmem>>, vector<1x4x16xf32>
    %99 = vector.shape_cast %98 : vector<1x4x16xf32> to vector<4x16xf32>
    %100 = vector.shape_cast %97 : vector<4x16xf32> to vector<1x4x16xf32>
    tpu.vector_store %arg7[%c0_72, %c0_73, %c16_74], %100 {strides = array<i32>} : memref<1x4x256xf32, #tpu.memory_space<vmem>>, vector<1x4x16xf32>,
    %101 = vector.extract_strided_slice %86 {offsets = [0, 36], sizes = [4, 16], strides = [1, 1]} : vector<4x288xf32> to vector<4x16xf32>
    %102 = vector.extract_strided_slice %88 {offsets = [0, 32], sizes = [4, 16], strides = [1, 1]} : vector<4x256xf32> to vector<4x16xf32>
    %103 = arith.addf %101, %102 : vector<4x16xf32>
    %c0_75 = arith.constant 0 : index
    %c0_76 = arith.constant 0 : index
    %c32_77 = arith.constant 32 : index
    %104 = vector.load %arg7[%c0_75, %c0_76, %c32_77] : memref<1x4x256xf32, #tpu.memory_space<vmem>>, vector<1x4x16xf32>
    %105 = vector.shape_cast %104 : vector<1x4x16xf32> to vector<4x16xf32>
    %106 = vector.shape_cast %103 : vector<4x16xf32> to vector<1x4x16xf32>
    tpu.vector_store %arg7[%c0_75, %c0_76, %c32_77], %106 {strides = array<i32>} : memref<1x4x256xf32, #tpu.memory_space<vmem>>, vector<1x4x16xf32>,
    %107 = vector.extract_strided_slice %86 {offsets = [0, 54], sizes = [4, 16], strides = [1, 1]} : vector<4x288xf32> to vector<4x16xf32>
    %108 = vector.extract_strided_slice %88 {offsets = [0, 48], sizes = [4, 16], strides = [1, 1]} : vector<4x256xf32> to vector<4x16xf32>
    %109 = arith.addf %107, %108 : vector<4x16xf32>
    %c0_78 = arith.constant 0 : index
    %c0_79 = arith.constant 0 : index
    %c48 = arith.constant 48 : index
    %110 = vector.load %arg7[%c0_78, %c0_79, %c48] : memref<1x4x256xf32, #tpu.memory_space<vmem>>, vector<1x4x16xf32>
    %111 = vector.shape_cast %110 : vector<1x4x16xf32> to vector<4x16xf32>
    %112 = vector.shape_cast %109 : vector<4x16xf32> to vector<1x4x16xf32>
    tpu.vector_store %arg7[%c0_78, %c0_79, %c48], %112 {strides = array<i32>} : memref<1x4x256xf32, #tpu.memory_space<vmem>>, vector<1x4x16xf32>,
    %113 = vector.extract_strided_slice %86 {offsets = [0, 72], sizes = [4, 16], strides = [1, 1]} : vector<4x288xf32> to vector<4x16xf32>
    %114 = vector.extract_strided_slice %88 {offsets = [0, 64], sizes = [4, 16], strides = [1, 1]} : vector<4x256xf32> to vector<4x16xf32>
    %115 = arith.addf %113, %114 : vector<4x16xf32>
    %c0_80 = arith.constant 0 : index
    %c0_81 = arith.constant 0 : index
    %c64 = arith.constant 64 : index
    %116 = vector.load %arg7[%c0_80, %c0_81, %c64] : memref<1x4x256xf32, #tpu.memory_space<vmem>>, vector<1x4x16xf32>
    %117 = vector.shape_cast %116 : vector<1x4x16xf32> to vector<4x16xf32>
    %118 = vector.shape_cast %115 : vector<4x16xf32> to vector<1x4x16xf32>
    tpu.vector_store %arg7[%c0_80, %c0_81, %c64], %118 {strides = array<i32>} : memref<1x4x256xf32, #tpu.memory_space<vmem>>, vector<1x4x16xf32>,
    %119 = vector.extract_strided_slice %86 {offsets = [0, 90], sizes = [4, 16], strides = [1, 1]} : vector<4x288xf32> to vector<4x16xf32>
    %120 = vector.extract_strided_slice %88 {offsets = [0, 80], sizes = [4, 16], strides = [1, 1]} : vector<4x256xf32> to vector<4x16xf32>
    %121 = arith.addf %119, %120 : vector<4x16xf32>
    %c0_82 = arith.constant 0 : index
    %c0_83 = arith.constant 0 : index
    %c80 = arith.constant 80 : index
    %122 = vector.load %arg7[%c0_82, %c0_83, %c80] : memref<1x4x256xf32, #tpu.memory_space<vmem>>, vector<1x4x16xf32>
    %123 = vector.shape_cast %122 : vector<1x4x16xf32> to vector<4x16xf32>
    %124 = vector.shape_cast %121 : vector<4x16xf32> to vector<1x4x16xf32>
    tpu.vector_store %arg7[%c0_82, %c0_83, %c80], %124 {strides = array<i32>} : memref<1x4x256xf32, #tpu.memory_space<vmem>>, vector<1x4x16xf32>,
    %125 = vector.extract_strided_slice %86 {offsets = [0, 108], sizes = [4, 16], strides = [1, 1]} : vector<4x288xf32> to vector<4x16xf32>
    %126 = vector.extract_strided_slice %88 {offsets = [0, 96], sizes = [4, 16], strides = [1, 1]} : vector<4x256xf32> to vector<4x16xf32>
    %127 = arith.addf %125, %126 : vector<4x16xf32>
    %c0_84 = arith.constant 0 : index
    %c0_85 = arith.constant 0 : index
    %c96 = arith.constant 96 : index
    %128 = vector.load %arg7[%c0_84, %c0_85, %c96] : memref<1x4x256xf32, #tpu.memory_space<vmem>>, vector<1x4x16xf32>
    %129 = vector.shape_cast %128 : vector<1x4x16xf32> to vector<4x16xf32>
    %130 = vector.shape_cast %127 : vector<4x16xf32> to vector<1x4x16xf32>
    tpu.vector_store %arg7[%c0_84, %c0_85, %c96], %130 {strides = array<i32>} : memref<1x4x256xf32, #tpu.memory_space<vmem>>, vector<1x4x16xf32>,
    %131 = vector.extract_strided_slice %86 {offsets = [0, 126], sizes = [4, 16], strides = [1, 1]} : vector<4x288xf32> to vector<4x16xf32>
    %132 = vector.extract_strided_slice %88 {offsets = [0, 112], sizes = [4, 16], strides = [1, 1]} : vector<4x256xf32> to vector<4x16xf32>
    %133 = arith.addf %131, %132 : vector<4x16xf32>
    %c0_86 = arith.constant 0 : index
    %c0_87 = arith.constant 0 : index
    %c112 = arith.constant 112 : index
    %134 = vector.load %arg7[%c0_86, %c0_87, %c112] : memref<1x4x256xf32, #tpu.memory_space<vmem>>, vector<1x4x16xf32>
    %135 = vector.shape_cast %134 : vector<1x4x16xf32> to vector<4x16xf32>
    %136 = vector.shape_cast %133 : vector<4x16xf32> to vector<1x4x16xf32>
    tpu.vector_store %arg7[%c0_86, %c0_87, %c112], %136 {strides = array<i32>} : memref<1x4x256xf32, #tpu.memory_space<vmem>>, vector<1x4x16xf32>,
    %137 = vector.extract_strided_slice %86 {offsets = [0, 144], sizes = [4, 16], strides = [1, 1]} : vector<4x288xf32> to vector<4x16xf32>
    %138 = vector.extract_strided_slice %88 {offsets = [0, 128], sizes = [4, 16], strides = [1, 1]} : vector<4x256xf32> to vector<4x16xf32>
    %139 = arith.addf %137, %138 : vector<4x16xf32>
    %c0_88 = arith.constant 0 : index
    %c0_89 = arith.constant 0 : index
    %c128 = arith.constant 128 : index
    %140 = vector.load %arg7[%c0_88, %c0_89, %c128] : memref<1x4x256xf32, #tpu.memory_space<vmem>>, vector<1x4x16xf32>
    %141 = vector.shape_cast %140 : vector<1x4x16xf32> to vector<4x16xf32>
    %142 = vector.shape_cast %139 : vector<4x16xf32> to vector<1x4x16xf32>
    tpu.vector_store %arg7[%c0_88, %c0_89, %c128], %142 {strides = array<i32>} : memref<1x4x256xf32, #tpu.memory_space<vmem>>, vector<1x4x16xf32>,
    %143 = vector.extract_strided_slice %86 {offsets = [0, 162], sizes = [4, 16], strides = [1, 1]} : vector<4x288xf32> to vector<4x16xf32>
    %144 = vector.extract_strided_slice %88 {offsets = [0, 144], sizes = [4, 16], strides = [1, 1]} : vector<4x256xf32> to vector<4x16xf32>
    %145 = arith.addf %143, %144 : vector<4x16xf32>
    %c0_90 = arith.constant 0 : index
    %c0_91 = arith.constant 0 : index
    %c144 = arith.constant 144 : index
    %146 = vector.load %arg7[%c0_90, %c0_91, %c144] : memref<1x4x256xf32, #tpu.memory_space<vmem>>, vector<1x4x16xf32>
    %147 = vector.shape_cast %146 : vector<1x4x16xf32> to vector<4x16xf32>
    %148 = vector.shape_cast %145 : vector<4x16xf32> to vector<1x4x16xf32>
    tpu.vector_store %arg7[%c0_90, %c0_91, %c144], %148 {strides = array<i32>} : memref<1x4x256xf32, #tpu.memory_space<vmem>>, vector<1x4x16xf32>,
    %149 = vector.extract_strided_slice %86 {offsets = [0, 180], sizes = [4, 16], strides = [1, 1]} : vector<4x288xf32> to vector<4x16xf32>
    %150 = vector.extract_strided_slice %88 {offsets = [0, 160], sizes = [4, 16], strides = [1, 1]} : vector<4x256xf32> to vector<4x16xf32>
    %151 = arith.addf %149, %150 : vector<4x16xf32>
    %c0_92 = arith.constant 0 : index
    %c0_93 = arith.constant 0 : index
    %c160 = arith.constant 160 : index
    %152 = vector.load %arg7[%c0_92, %c0_93, %c160] : memref<1x4x256xf32, #tpu.memory_space<vmem>>, vector<1x4x16xf32>
    %153 = vector.shape_cast %152 : vector<1x4x16xf32> to vector<4x16xf32>
    %154 = vector.shape_cast %151 : vector<4x16xf32> to vector<1x4x16xf32>
    tpu.vector_store %arg7[%c0_92, %c0_93, %c160], %154 {strides = array<i32>} : memref<1x4x256xf32, #tpu.memory_space<vmem>>, vector<1x4x16xf32>,
    %155 = vector.extract_strided_slice %86 {offsets = [0, 198], sizes = [4, 16], strides = [1, 1]} : vector<4x288xf32> to vector<4x16xf32>
    %156 = vector.extract_strided_slice %88 {offsets = [0, 176], sizes = [4, 16], strides = [1, 1]} : vector<4x256xf32> to vector<4x16xf32>
    %157 = arith.addf %155, %156 : vector<4x16xf32>
    %c0_94 = arith.constant 0 : index
    %c0_95 = arith.constant 0 : index
    %c176 = arith.constant 176 : index
    %158 = vector.load %arg7[%c0_94, %c0_95, %c176] : memref<1x4x256xf32, #tpu.memory_space<vmem>>, vector<1x4x16xf32>
    %159 = vector.shape_cast %158 : vector<1x4x16xf32> to vector<4x16xf32>
    %160 = vector.shape_cast %157 : vector<4x16xf32> to vector<1x4x16xf32>
    tpu.vector_store %arg7[%c0_94, %c0_95, %c176], %160 {strides = array<i32>} : memref<1x4x256xf32, #tpu.memory_space<vmem>>, vector<1x4x16xf32>,
    %161 = vector.extract_strided_slice %86 {offsets = [0, 216], sizes = [4, 16], strides = [1, 1]} : vector<4x288xf32> to vector<4x16xf32>
    %162 = vector.extract_strided_slice %88 {offsets = [0, 192], sizes = [4, 16], strides = [1, 1]} : vector<4x256xf32> to vector<4x16xf32>
    %163 = arith.addf %161, %162 : vector<4x16xf32>
    %c0_96 = arith.constant 0 : index
    %c0_97 = arith.constant 0 : index
    %c192 = arith.constant 192 : index
    %164 = vector.load %arg7[%c0_96, %c0_97, %c192] : memref<1x4x256xf32, #tpu.memory_space<vmem>>, vector<1x4x16xf32>
    %165 = vector.shape_cast %164 : vector<1x4x16xf32> to vector<4x16xf32>
    %166 = vector.shape_cast %163 : vector<4x16xf32> to vector<1x4x16xf32>
    tpu.vector_store %arg7[%c0_96, %c0_97, %c192], %166 {strides = array<i32>} : memref<1x4x256xf32, #tpu.memory_space<vmem>>, vector<1x4x16xf32>,
    %167 = vector.extract_strided_slice %86 {offsets = [0, 234], sizes = [4, 16], strides = [1, 1]} : vector<4x288xf32> to vector<4x16xf32>
    %168 = vector.extract_strided_slice %88 {offsets = [0, 208], sizes = [4, 16], strides = [1, 1]} : vector<4x256xf32> to vector<4x16xf32>
    %169 = arith.addf %167, %168 : vector<4x16xf32>
    %c0_98 = arith.constant 0 : index
    %c0_99 = arith.constant 0 : index
    %c208 = arith.constant 208 : index
    %170 = vector.load %arg7[%c0_98, %c0_99, %c208] : memref<1x4x256xf32, #tpu.memory_space<vmem>>, vector<1x4x16xf32>
    %171 = vector.shape_cast %170 : vector<1x4x16xf32> to vector<4x16xf32>
    %172 = vector.shape_cast %169 : vector<4x16xf32> to vector<1x4x16xf32>
    tpu.vector_store %arg7[%c0_98, %c0_99, %c208], %172 {strides = array<i32>} : memref<1x4x256xf32, #tpu.memory_space<vmem>>, vector<1x4x16xf32>,
    %173 = vector.extract_strided_slice %86 {offsets = [0, 252], sizes = [4, 16], strides = [1, 1]} : vector<4x288xf32> to vector<4x16xf32>
    %174 = vector.extract_strided_slice %88 {offsets = [0, 224], sizes = [4, 16], strides = [1, 1]} : vector<4x256xf32> to vector<4x16xf32>
    %175 = arith.addf %173, %174 : vector<4x16xf32>
    %c0_100 = arith.constant 0 : index
    %c0_101 = arith.constant 0 : index
    %c224 = arith.constant 224 : index
    %176 = vector.load %arg7[%c0_100, %c0_101, %c224] : memref<1x4x256xf32, #tpu.memory_space<vmem>>, vector<1x4x16xf32>
    %177 = vector.shape_cast %176 : vector<1x4x16xf32> to vector<4x16xf32>
    %178 = vector.shape_cast %175 : vector<4x16xf32> to vector<1x4x16xf32>
    tpu.vector_store %arg7[%c0_100, %c0_101, %c224], %178 {strides = array<i32>} : memref<1x4x256xf32, #tpu.memory_space<vmem>>, vector<1x4x16xf32>,
    %179 = vector.extract_strided_slice %86 {offsets = [0, 270], sizes = [4, 16], strides = [1, 1]} : vector<4x288xf32> to vector<4x16xf32>
    %180 = vector.extract_strided_slice %88 {offsets = [0, 240], sizes = [4, 16], strides = [1, 1]} : vector<4x256xf32> to vector<4x16xf32>
    %181 = arith.addf %179, %180 : vector<4x16xf32>
    %c0_102 = arith.constant 0 : index
    %c0_103 = arith.constant 0 : index
    %c240 = arith.constant 240 : index
    %182 = vector.load %arg7[%c0_102, %c0_103, %c240] : memref<1x4x256xf32, #tpu.memory_space<vmem>>, vector<1x4x16xf32>
    %183 = vector.shape_cast %182 : vector<1x4x16xf32> to vector<4x16xf32>
    %184 = vector.shape_cast %181 : vector<4x16xf32> to vector<1x4x16xf32>
    tpu.vector_store %arg7[%c0_102, %c0_103, %c240], %184 {strides = array<i32>} : memref<1x4x256xf32, #tpu.memory_space<vmem>>, vector<1x4x16xf32>,
    return
  }
  func.func @transform_0(%arg0: i32) -> (i32, i32, i32) {
    %c0_i32 = arith.constant 0 : i32
    %c0_i32_0 = arith.constant 0 : i32
    %c0_i32_1 = arith.constant 0 : i32
    return %arg0, %c0_i32, %c0_i32_0 : i32, i32, i32
  }
  func.func @transform_1(%arg0: i32) -> (i32, i32) {
    %c0_i32 = arith.constant 0 : i32
    %c0_i32_0 = arith.constant 0 : i32
    %c0_i32_1 = arith.constant 0 : i32
    return %c0_i32, %c0_i32_0 : i32, i32
  }
  func.func @transform_2(%arg0: i32) -> (i32, i32, i32) {
    %c0_i32 = arith.constant 0 : i32
    %c0_i32_0 = arith.constant 0 : i32
    %c0_i32_1 = arith.constant 0 : i32
    %c0_i32_2 = arith.constant 0 : i32
    return %c0_i32, %c0_i32_0, %c0_i32_1 : i32, i32, i32
  }
  func.func @transform_3(%arg0: i32) -> (i32, i32, i32) {
    %c0_i32 = arith.constant 0 : i32
    %c0_i32_0 = arith.constant 0 : i32
    %c0_i32_1 = arith.constant 0 : i32
    %c0_i32_2 = arith.constant 0 : i32
    return %c0_i32, %c0_i32_0, %c0_i32_1 : i32, i32, i32
  }
  func.func @transform_4(%arg0: i32) -> (i32, i32) {
    %c0_i32 = arith.constant 0 : i32
    %c0_i32_0 = arith.constant 0 : i32
    %c0_i32_1 = arith.constant 0 : i32
    return %c0_i32, %c0_i32_0 : i32, i32
  }
  func.func @transform_5(%arg0: i32) -> (i32, i32) {
    %c0_i32 = arith.constant 0 : i32
    %c0_i32_0 = arith.constant 0 : i32
    %c0_i32_1 = arith.constant 0 : i32
    return %c0_i32, %c0_i32_0 : i32, i32
  }
  func.func @transform_6(%arg0: i32) -> (i32, i32, i32) {
    %c0_i32 = arith.constant 0 : i32
    %c0_i32_0 = arith.constant 0 : i32
    %c0_i32_1 = arith.constant 0 : i32
    return %arg0, %c0_i32, %c0_i32_0 : i32, i32, i32
  }
}

</mosaic_0001>

<bundles_post_ra>
// kernel: residual_group_forward.1
= control target key start
LH: loop header
LB: loop body
LE: loop exit
PB: predicated region body
PF: predicated region fallthrough
CT: control target
= control target key end

     0   :  { %s1915_s21 = smov 0   ;;  %s2233_s0 = inlined_call_operand.vmem [shape: f32[2,4,256], index: 0, kind: input, shape index: {}]   ;;  %s2234_s1 = inlined_call_operand.vmem [shape: f32[1,288], index: 1, kind: input, shape index: {}]   ;;  %s2235_s2 = inlined_call_operand.vmem [shape: bf16[4,4,36], index: 2, kind: input, shape index: {}]   ;;  %s2236_s3 = inlined_call_operand.vmem [shape: f32[4,4,1], index: 3, kind: input, shape index: {}]   ;;  %s2237_s4 = inlined_call_operand.vmem [shape: bf16[4,36], index: 4, kind: input, shape index: {}]   ;;  %s2238_s5 = inlined_call_operand.vmem [shape: f32[4,1], index: 5, kind: input, shape index: {}]   ;;  %s2239_s6 = inlined_call_operand.vmem [shape: f32[2,4,256], index: 6, kind: output, shape index: {}]  }
   0x1 LB: > { %s1563_s22 = sadd.s32 4294967295, %s1808_s21   ;;  %p1567_p0 = scmp.ge.s32.totalorder %s1808_s21, 1  ;;  %s1808_s21 = sphi %s1915_s21, %s16_s21  }
   0x2   : > { %p212_p1 = scmp.lt.s32.totalorder %s1808_s21, 3 }
   0x4   : > { %p213_p2 = pnand %p1567_p0, %p212_p1 }
   0x5   : > { %p242_p3 = scmp.lt.s32.totalorder (!%p213_p2), %s1563_s22, 1  ;;  %s1815_s30 = smov (!%p213_p2), 23  }
   0x6   : > { %216 = sbr.rel (%p213_p2) target bundleno = 1657 (0x679), region = 44  ;;  %s1816_s7 = smov (!%p213_p2), 19  }
   0x7   : > { %s1817_s8 = smov (!%p213_p2), 25   ;;  %s1818_s9 = smov (!%p213_p2), 21  }
   0x8   : > { %s1819_s10 = smov (!%p213_p2), 31   ;;  %s1820_s11 = smov (!%p213_p2), 27  }
   0x9   : > { %s1821_s12 = smov (!%p213_p2), 35   ;;  %s1822_s13 = smov (!%p213_p2), 29  }
   0xa   : > { %s1823_s14 = smov (!%p213_p2), 37   ;;  %s1824_s15 = smov (!%p213_p2), 33  }
   0xb   : > { %vm255_vm0 = vcmask 150528   ;;  %v1814_v0 = vmov 0.0   ;;  %s2261_s22 = smov (!%p242_p3, %s1563_s22), 1  ;;  %vm257_vm1 = vcmask 1043856   ;;  %s1825_s16 = smov 41   ;;  %vm266_vm3 = vcmask 281752  }
   0xc   : > { %256 = vst.msk [vmem:[#allocation2] sm:$0xf] %vm255_vm0, %v1814_v0  ;;  %259 = vst.msk [vmem:[#allocation3] sm:$0xf] %vm255_vm0, %v1814_v0  ;;  %s1625_s23 = sshll.u32 %s2261_s22, 3  ;;  %s1826_s17 = smov 39  }
   0xd   : > { %s1928_s26 = scalar_lea.vmem %s2233_s0, %s1625_s23  ;;  %s1933_s29 = scalar_lea.vmem %s2239_s6, %s1625_s23  ;;  %258 = vst.msk [vmem:[#allocation2 + $0x8] sm:$0xf] %vm257_vm1, %v1814_v0  ;;  %260 = vst.msk [vmem:[#allocation3 + $0x8] sm:$0xf] %vm257_vm1, %v1814_v0  ;;  %v1941_v2 = vld [vmem:[%s2234_s1] sm:$0x7] }
   0xe   : > { %v261_v1 = vld [vmem:[%s1928_s26] sm:$0xff]  ;;  %s1827_s20 = smov 45   ;;  %s1828_s22 = smov 43   ;;  %vm268_vm4 = vcmask 298264   ;;  %vm273_vm5 = vcmask 429352   ;;  %vm275_vm6 = vcmask 445864  }
   0xf   : > { %277 = vrot.lane.b32.xlu1 %v261_v1, %s1815_s30  ;;  %263 = vrot.lane.b32.xlu0 %v261_v1, %s1816_s7  ;;  %s1829_s23 = smov 47   ;;  %s1830_s24 = smov 49   ;;  %vm280_vm7 = vcmask 576952   ;;  %vm282_vm8 = vcmask 593464   ;;  %vm287_vm9 = vcmask 724552   ;;  %vm289_vm10 = vcmask 741064  }
  0x10   : > { %vm294_vm11 = vcmask 872152   ;;  %vm296_vm12 = vcmask 888664   ;;  %vm311_vm13 = vcmask 1044472   ;;  %vm312_vm14 = vcmask 121860   ;;  %s1960_s25 = smov 0  }
  0x11   : > { %vm301_vm15 = vcmask 1019752   ;;  %vm308_vm0 = vcmask 252928   ;;  %vm303_vm1 = vcmask 1036264  }
  0x13   : > { %284 = vrot.lane.b32.xlu1 %v261_v1, %s1817_s8  ;;  %270 = vrot.lane.b32.xlu0 %v261_v1, %s1818_s9 }
  0x17   : > { %305 = vrot.lane.b32.xlu1 %v261_v1, %s1819_s10  ;;  %291 = vrot.lane.b32.xlu0 %v261_v1, %s1820_s11 }
  0x1b   : > { %324 = vrot.lane.b32.xlu1 %v261_v1, %s1821_s12  ;;  %298 = vrot.lane.b32.xlu0 %v261_v1, %s1822_s13 }
  0x1f   : > { %334 = vrot.lane.b32.xlu1 %v261_v1, %s1823_s14  ;;  %317 = vrot.lane.b32.xlu0 %v261_v1, %s1824_s15 }
  0x23   : > { %354 = vrot.lane.b32.xlu1 %v261_v1, %s1825_s16  ;;  %344 = vrot.lane.b32.xlu0 %v261_v1, %s1826_s17 }
  0x27   : > { %374 = vrot.lane.b32.xlu1 %v261_v1, %s1827_s20  ;;  %364 = vrot.lane.b32.xlu0 %v261_v1, %s1828_s22 }
  0x2b   : > { %386 = vrot.lane.b32.xlu0 %v261_v1, %s1829_s23  ;;  %394 = vrot.lane.b32.xlu1 %v261_v1, %s1830_s24 }
  0x81   : > { %v278_v3 = vpop.permute.xlu1 %277  ;;  %v264_v4 = vpop.permute.xlu0 %263 }
  0x82   : > { %267 = vst.msk [vmem:[#allocation2] sm:$0xf] %vm266_vm3, %v264_v4  ;;  %vm313_vm3 = vmor %vm312_vm14, %vm311_vm13  ;;  %vm347_vm13 = vcmask 318464   ;;  %vm350_vm14 = vcmask 708152  }
  0x83   : > { %269 = vst.msk [vmem:[#allocation2] sm:$0xf] %vm268_vm4, %v1814_v0  ;;  %vm315_vm4 = vcmask 134264  }
  0x85   : > { %v285_v5 = vpop.permute.xlu1 %284  ;;  %v271_v6 = vpop.permute.xlu0 %270 }
  0x86   : > { %274 = vst.msk [vmem:[#allocation2] sm:$0xf] %vm273_vm5, %v271_v6  ;;  %vm320_vm5 = vcmask 265352  }
  0x87   : > { %276 = vst.msk [vmem:[#allocation2] sm:$0xf] %vm275_vm6, %v1814_v0  ;;  %vm327_vm6 = vcmask 285696  }
  0x88   : > { %281 = vst.msk [vmem:[#allocation2] sm:$0xf] %vm280_vm7, %v278_v3  ;;  %vm322_vm7 = vcmask 281864  }
  0x89   : > { %v306_v7 = vpop.permute.xlu1 %305  ;;  %283 = vst.msk [vmem:[#allocation2] sm:$0xf] %vm282_vm8, %v1814_v0  ;;  %v292_v8 = vpop.permute.xlu0 %291  ;;  %vm337_vm8 = vcmask 302080  }
  0x8a   : > { %288 = vst.msk [vmem:[#allocation2] sm:$0xf] %vm287_vm9, %v285_v5  ;;  %v307_v9 = vrot.slane %v306_v7, 4  ;;  %vm330_vm9 = vcmask 412952  }
  0x8b   : > { %290 = vst.msk [vmem:[#allocation2] sm:$0xf] %vm289_vm10, %v1814_v0  ;;  %vm332_vm10 = vcmask 429464  }
  0x8c   : > { %295 = vst.msk [vmem:[#allocation2] sm:$0xf] %vm294_vm11, %v292_v8  ;;  %v309_v12 = vsel %vm308_vm0, %v307_v9, %v306_v7  ;;  %vm340_vm11 = vcmask 560552   ;;  %vm352_vm0 = vcmask 724664  }
  0x8d   : > { %v325_v10 = vpop.permute.xlu1 %324  ;;  %297 = vst.msk [vmem:[#allocation2] sm:$0xf] %vm296_vm12, %v1814_v0  ;;  %v299_v11 = vpop.permute.xlu0 %298  ;;  %vm342_vm12 = vcmask 577064  }
  0x8e   : > { %302 = vst.msk [vmem:[#allocation2] sm:$0xf] %vm301_vm15, %v299_v11  ;;  %v326_v13 = vrot.slane %v325_v10, 4  ;;  %vm357_vm15 = vcmask 334848  }
  0x8f   : > { %304 = vst.msk [vmem:[#allocation2] sm:$0xf] %vm303_vm1, %v1814_v0  ;;  %vm360_vm1 = vcmask 855752  }
  0x90   : > { %314 = vst.msk [vmem:[#allocation2] sm:$0xff] %vm313_vm3, %v309_v12  ;;  %v328_v17 = vsel %vm327_vm6, %v325_v10, %v326_v13  ;;  %vm362_vm3 = vcmask 872264   ;;  %vm381_vm6 = vcmask 105476  }
  0x91   : > { %v335_v14 = vpop.permute.xlu1 %334  ;;  %316 = vst.msk [vmem:[#allocation2 + $0x4] sm:$0xf] %vm315_vm4, %v1814_v0  ;;  %v318_v15 = vpop.permute.xlu0 %317  ;;  %vm367_vm4 = vcmask 351232  }
  0x92   : > { %v336_v16 = vrot.slane %v335_v14, 4  ;;  %321 = vst.msk [vmem:[#allocation2 + $0x4] sm:$0xf] %vm320_vm5, %v318_v15  ;;  %vm380_vm5 = vcmask 1044456  }
  0x93   : > { %323 = vst.msk [vmem:[#allocation2 + $0x4] sm:$0xf] %vm322_vm7, %v1814_v0  ;;  %vm370_vm7 = vcmask 1003352  }
  0x94   : > { %v338_v18 = vsel %vm337_vm8, %v335_v14, %v336_v16  ;;  %331 = vst.msk [vmem:[#allocation2 + $0x4] sm:$0xf] %vm330_vm9, %v328_v17  ;;  %vm377_vm8 = vcmask 367616   ;;  %vm372_vm9 = vcmask 1019864  }
  0x95   : > { %333 = vst.msk [vmem:[#allocation2 + $0x4] sm:$0xf] %vm332_vm10, %v1814_v0  ;;  %v355_v19 = vpop.permute.xlu1 %354  ;;  %v345_v20 = vpop.permute.xlu0 %344  ;;  %vm382_vm10 = vmor %vm381_vm6, %vm380_vm5 }
  0x96   : > { %v356_v21 = vrot.slane %v355_v19, 4  ;;  %341 = vst.msk [vmem:[#allocation2 + $0x4] sm:$0xf] %vm340_vm11, %v338_v18  ;;  %v346_v22 = vrot.slane %v345_v20, 4  ;;  %vm384_vm11 = vcmask 117864  }
  0x97   : > { %343 = vst.msk [vmem:[#allocation2 + $0x4] sm:$0xf] %vm342_vm12, %v1814_v0  ;;  %vm390_vm12 = vcmask 248952  }
  0x98   : > { %v348_v23 = vsel %vm347_vm13, %v345_v20, %v346_v22  ;;  %v358_v26 = vsel %vm357_vm15, %v355_v19, %v356_v21  ;;  %vm392_vm13 = vcmask 265464   ;;  %vm400_vm15 = vcmask 413064  }
  0x99   : > { %351 = vst.msk [vmem:[#allocation2 + $0x4] sm:$0xf] %vm350_vm14, %v348_v23  ;;  %v375_v24 = vpop.permute.xlu1 %374  ;;  %v365_v25 = vpop.permute.xlu0 %364  ;;  %vm398_vm14 = vcmask 396552  }
  0x9a   : > { %353 = vst.msk [vmem:[#allocation2 + $0x4] sm:$0xf] %vm352_vm0, %v1814_v0  ;;  %v376_v27 = vrot.slane %v375_v24, 4  ;;  %v366_v28 = vrot.slane %v365_v25, 4 }
  0x9b   : > { %361 = vst.msk [vmem:[#allocation2 + $0x4] sm:$0xf] %vm360_vm1, %v358_v26 }
  0x9c   : > { %363 = vst.msk [vmem:[#allocation2 + $0x4] sm:$0xf] %vm362_vm3, %v1814_v0  ;;  %v368_v29 = vsel %vm367_vm4, %v365_v25, %v366_v28  ;;  %v378_v32 = vsel %vm377_vm8, %v375_v24, %v376_v27 }
  0x9d   : > { %371 = vst.msk [vmem:[#allocation2 + $0x4] sm:$0xf] %vm370_vm7, %v368_v29  ;;  %v387_v30 = vpop.permute.xlu0 %386  ;;  %v395_v31 = vpop.permute.xlu1 %394 }
  0x9e   : > { %373 = vst.msk [vmem:[#allocation2 + $0x4] sm:$0xf] %vm372_vm9, %v1814_v0  ;;  %v388_v33 = vrot.slane %v387_v30, 4  ;;  %v396_v34 = vrot.slane %v395_v31, 4 }
  0x9f   : > { %383 = vst.msk [vmem:[#allocation2 + $0x4] sm:$0xff] %vm382_vm10, %v378_v32 }
  0xa0   : > { %385 = vst.msk [vmem:[#allocation2 + $0x8] sm:$0xf] %vm384_vm11, %v1814_v0 }
  0xa1   : > { %391 = vst.msk [vmem:[#allocation2 + $0x8] sm:$0xf] %vm390_vm12, %v388_v33 }
  0xa2   : > { %393 = vst.msk [vmem:[#allocation2 + $0x8] sm:$0xf] %vm392_vm13, %v1814_v0 }
  0xa3   : > { %399 = vst.msk [vmem:[#allocation2 + $0x8] sm:$0xf] %vm398_vm14, %v396_v34 }
  0xa4   : > { %401 = vst.msk [vmem:[#allocation2 + $0x8] sm:$0xf] %vm400_vm15, %v1814_v0 }
  0xa5 LB: >> { %vm441_vm0 = vcmask 254976   ;;  %s1831_s27 = smov 109   ;;  %s1832_s28 = smov 90   ;;  %v1833_v40 = vmov 0.0   ;;  %v1840_v43 = vmov 0   ;;  %vm1841_vm1 = vmmov 0   ;;  %s1812_s25 = sphi %s1960_s25, %s407_s25  }
  0xa6   : >> { %v1965_v36 = vld [vmem:[#allocation2] sm:$0xff]  ;;  %1649 = vmatprep.subr.bf16.mxu1 %v1833_v40  ;;  %s1834_s30 = smov 108   ;;  %s1835_s7 = smov 92   ;;  %652 = vmatprep.mubr.bf16.mxu0 %v1840_v43  ;;  %vm451_vm3 = vcmask 1043456   ;;  %vm493_vm4 = vcmask 891904   ;;  %vm545_vm5 = vcmask 736256  }
  0xa7   : >> { %v1969_v38 = vcombine.high %v1965_v36, %v1965_v36  ;;  %s1836_s8 = smov 91   ;;  %s1837_s9 = smov 127   ;;  %1761 = vset.pattern.permute.xlu0 %v1840_v43  ;;  %1655 = vmatprep.mubr.msk.bf16.mxu1 %vm1841_vm1, %v1833_v40  ;;  %vm458_vm6 = vcmask 257026   ;;  %vm610_vm7 = vcmask 1041408   ;;  %vm506_vm8 = vcmask 883712  }
  0xa8   : >> { %s1838_s10 = smov 126   ;;  %s1839_s11 = smov 110   ;;  %vm519_vm9 = vcmask 752640   ;;  %vm532_vm10 = vcmask 744448   ;;  %vm2242_vm11 = vcmask 1039360   ;;  %vm2245_vm12 = vcmask 1031168  }
  0xa9   : >> { %v1631_v39 = vpack.c.bf16 %v1969_v38, %v1965_v36  ;;  %s1628_s12 = sshll.u32 %s1812_s25, 3  ;;  %vm2241_vm13 = vcmask 900096   ;;  %s1627_s16 = sshll.u32 %s1812_s25, 2  ;;  %vm2240_vm14 = vcmask 293888   ;;  %vm2246_vm2 = vcmp.ne.f32.partialorder %v1941_v2, 0.0 }
  0xaa   : >> { %s1999_s15 = scalar_lea.vmem %s2236_s3, %s1628_s12  ;;  %s2035_s19 = scalar_lea.vmem %s2235_s2, %s1627_s16 }
  0xab   : >> { %v423_v35 = vld [vmem:[#allocation2 + $0x8] sm:$0xf]  ;;  %440 = vst [vmem:[#allocation4] sm:$0x33] %v1631_v39  ;;  %v443_v42 = vrot.slane %v1631_v39, 6  ;;  %s1842_s20 = smov 19  }
  0xac   : >> { %v1632_v37 = vpack.c.bf16 %v423_v35, %v423_v35  ;;  %v414_v44 = vld [vmem:[%s1999_s15] sm:$0xf]  ;;  %s407_s25 = sadd.s32 1, %s1812_s25  }
  0xad   : >> { %p404_p4 = scmp.ge.s32.totalorder %s407_s25, 2  }
  0xae   : >> { %488 = vrot.lane.b32.xlu1 %v1632_v37, %s1831_s27  ;;  %540 = vrot.lane.b32.xlu0 %v1632_v37, %s1832_s28  ;;  %442 = vst.msk [vmem:[#allocation4 + $0x8] sm:$0x3] %vm441_vm0, %v1632_v37  ;;  %v444_v41 = vrot.slane %v1632_v37, 6  ;;  %s1843_s22 = smov (%p404_p4), 109   ;;  %s1844_s23 = smov (%p404_p4), 90   ;;  %v1852_v2 = vmov (%p404_p4), 0  }
  0xaf   : > { %s1845_s24 = smov (%p404_p4), 108   ;;  %s1846_s25 = smov (%p404_p4), 92  }
  0xb0   : > { %s1855_s12 = smov (%p404_p4), 2   ;;  %s1856_s13 = smov (%p404_p4), 4  }
  0xb1   : > { %s1857_s14 = smov (%p404_p4), 28   ;;  %s1860_s16 = smov (%p404_p4), 22  }
  0xb2   : >> { %486 = vrot.lane.b32.xlu1 %v1631_v39, %s1831_s27  ;;  %538 = vrot.lane.b32.xlu0 %v1631_v39, %s1832_s28  ;;  %s1861_s17 = smov (%p404_p4), 6   ;;  %s1862_s18 = smov (%p404_p4), 24  }
  0xb6   : >> { %501 = vrot.lane.b32.xlu1 %v444_v41, %s1834_s30  ;;  %499 = vrot.lane.b32.xlu0 %v443_v42, %s1834_s30 }
  0xba   : >> { %514 = vrot.lane.b32.xlu1 %v1632_v37, %s1835_s7  ;;  %512 = vrot.lane.b32.xlu0 %v1631_v39, %s1835_s7 }
  0xbe   : >> { %527 = vrot.lane.b32.xlu1 %v444_v41, %s1836_s8  ;;  %525 = vrot.lane.b32.xlu0 %v443_v42, %s1836_s8 }
  0xc2   : >> { %447 = vrot.lane.b32.xlu1 %v444_v41, %s1837_s9  ;;  %445 = vrot.lane.b32.xlu0 %v443_v42, %s1837_s9 }
  0xc6   : >> { %462 = vrot.lane.b32.xlu1 %v1632_v37, %s1838_s10  ;;  %460 = vrot.lane.b32.xlu0 %v1631_v39, %s1838_s10 }
  0xca   : >> { %475 = vrot.lane.b32.xlu1 %v444_v41, %s1839_s11  ;;  %473 = vrot.lane.b32.xlu0 %v443_v42, %s1839_s11 }
  0xce   : >> { %563 = vperm.xlu0 %1761, %v414_v44  }
 0x120   : >> { %v489_v45 = vpop.permute.xlu1 %488  ;;  %v541_v46 = vpop.permute.xlu0 %540 }
 0x121   : >> { %498 = vst.msk [vmem:[#allocation4 + $0x20] sm:$0x3] %vm441_vm0, %v489_v45  ;;  %550 = vst.msk [vmem:[#allocation4 + $0x38] sm:$0x3] %vm441_vm0, %v541_v46  ;;  %v491_v49 = vrot.slane %v489_v45, 4  ;;  %v543_v50 = vrot.slane %v541_v46, 4 }
 0x122   : >> { %v411_v45 = vld [vmem:[%s2035_s19] sm:$0x3] }
 0x124   : >> { %v487_v47 = vpop.permute.xlu1 %486  ;;  %v539_v48 = vpop.permute.xlu0 %538 }
 0x125   : >> { %v490_v51 = vrot.slane %v487_v47, 4  ;;  %v542_v52 = vrot.slane %v539_v48, 4 }
 0x127   : >> { %v492_v53 = vsel %vm451_vm3, %v490_v51, %v491_v49  ;;  %v544_v54 = vsel %vm451_vm3, %v542_v52, %v543_v50 }
 0x128   : >> { %v494_v55 = vsel %vm493_vm4, %v487_v47, %v492_v53  ;;  %v546_v56 = vsel %vm545_vm5, %v539_v48, %v544_v54  ;;  %v502_v57 = vpop.permute.xlu1 %501  ;;  %v500_v58 = vpop.permute.xlu0 %499  ;;  %v1763_v59 = vld [vmem:[#allocation4 + $0x38] ss:$0 sps:$4 sm:$0x33]   ;;  %v705_v48 = vlaneseq  ;;  %v704_v53 = vsel %vm2246_vm2, 1, %v1840_v43 }
 0x129   : >> { %497 = vst [vmem:[#allocation4 + $0x18] sm:$0x33] %v494_v55  ;;  %549 = vst [vmem:[#allocation4 + $0x30] sm:$0x33] %v546_v56  ;;  %v504_v60 = vrot.slane %v502_v57, 4  ;;  %v503_v61 = vrot.slane %v500_v58, 4 }
 0x12a   : >> { %511 = vst.msk [vmem:[#allocation4 + $0x20] sm:$0xc] %vm458_vm6, %v502_v57  ;;  %v618_v62 = vsel %vm610_vm7, %v1763_v59, 0  ;;  %v706_v49 = vshrl.u32 %v705_v48, 7 }
 0x12b   : >> { %v505_v63 = vsel %vm451_vm3, %v503_v61, %v504_v60  ;;  %1650 = vmatpush3.bf16.msra.mxu1 %v618_v62 }
 0x12c   : >> { %v507_v1 = vsel %vm506_vm8, %v500_v58, %v505_v63  ;;  %v515_v3 = vpop.permute.xlu1 %514  ;;  %v513_v4 = vpop.permute.xlu0 %512  ;;  %1651 = vmatprep.subr.bf16.mxu1 %v1833_v40  ;;  %v707_v51 = vsub.s32 0, %v706_v49  ;;  %v711_v52 = vsub.s32 1, %v706_v49  ;;  %v715_v63 = vsub.s32 2, %v706_v49 }
 0x12d   : >> { %510 = vst [vmem:[#allocation4 + $0x18] sm:$0xcc] %v507_v1  ;;  %v517_v5 = vrot.slane %v515_v3, 4  ;;  %524 = vst.msk [vmem:[#allocation4 + $0x2c] sm:$0x3] %vm441_vm0, %v515_v3  ;;  %v516_v6 = vrot.slane %v513_v4, 4 }
 0x12e   : >> { %v2047_v58 = vrot.slane %v704_v53, %v707_v51  ;;  %v2049_v59 = vrot.slane %v704_v53, %v711_v52 }
 0x12f   : >> { %v518_v7 = vsel %vm451_vm3, %v516_v6, %v517_v5 }
 0x130   : >> { %v520_v8 = vsel %vm519_vm9, %v513_v4, %v518_v7  ;;  %v528_v9 = vpop.permute.xlu1 %527  ;;  %v526_v10 = vpop.permute.xlu0 %525  ;;  %v559_v11 = vld [vmem:[#allocation4 + $0x30] sm:$0x33]  ;;  %vm2243_vm15 = vcmp.eq.s32.totalorder %v2047_v58, 1  ;;  %v2053_v7 = vrot.slane %v704_v53, %v715_v63 }
 0x131   : >> { %523 = vst [vmem:[#allocation4 + $0x24] sm:$0x33] %v520_v8  ;;  %v530_v12 = vrot.slane %v528_v9, 4  ;;  %537 = vst.msk [vmem:[#allocation4 + $0x2c] sm:$0xc] %vm458_vm6, %v528_v9  ;;  %v529_v13 = vrot.slane %v526_v10, 4  ;;  %v1590_v14 = vcombine.high %v559_v11, %v559_v11  ;;  %v1589_v15 = vcombine.low %v559_v11, %v559_v11 }
 0x132   : >> { %vm719_vm2 = vcmp.eq.s32.totalorder %v2053_v7, 1 }
 0x133   : >> { %v531_v16 = vsel %vm451_vm3, %v529_v13, %v530_v12  ;;  %1592 = vmatprep.subr.msk.bf16.mxu0 %vm610_vm7, %v1590_v14  ;;  %v612_v17 = vsel %vm610_vm7, %v1589_v15, 0 }
 0x134   : >> { %v533_v18 = vsel %vm532_vm10, %v526_v10, %v531_v16  ;;  %v448_v19 = vpop.permute.xlu1 %447  ;;  %631 = vmatpush1.bf16.msra.mxu0 %v612_v17  ;;  %v446_v20 = vpop.permute.xlu0 %445 }
 0x135   : >> { %536 = vst [vmem:[#allocation4 + $0x24] sm:$0xcc] %v533_v18  ;;  %v450_v21 = vrot.slane %v448_v19, 4  ;;  %459 = vst.msk [vmem:[#allocation4 + $0x8] sm:$0xc] %vm458_vm6, %v448_v19  ;;  %v449_v22 = vrot.slane %v446_v20, 4 }
 0x137   : >> { %v452_v23 = vsel %vm451_vm3, %v449_v22, %v450_v21 }
 0x138   : >> { %v454_v24 = vsel %vm2242_vm11, %v446_v20, %v452_v23  ;;  %v463_v25 = vpop.permute.xlu1 %462  ;;  %v461_v26 = vpop.permute.xlu0 %460  ;;  %v1765_v27 = vld [vmem:[#allocation4 + $0x20] ss:$12 sps:$4 sm:$0xff]   ;;  %vm732_vm11 = vcmask 154624  }
 0x139   : >> { %457 = vst [vmem:[#allocation4] sm:$0xcc] %v454_v24  ;;  %v465_v28 = vrot.slane %v463_v25, 4  ;;  %472 = vst.msk [vmem:[#allocation4 + $0x14] sm:$0x3] %vm441_vm0, %v463_v25  ;;  %v464_v29 = vrot.slane %v461_v26, 4  ;;  %1652 = vmatpush3.bf16.msra.mxu1 %v1765_v27 }
 0x13a   : >> { %1653 = vmatprep.subr.bf16.mxu1 %v1833_v40  ;;  %v1010_v27 = vld [vmem:[#allocation2 + $0x8] sm:$0xf] }
 0x13b   : >> { %v466_v30 = vsel %vm451_vm3, %v464_v29, %v465_v28 }
 0x13c   : >> { %v468_v31 = vsel %vm2245_vm12, %v461_v26, %v466_v30  ;;  %v476_v32 = vpop.permute.xlu1 %475  ;;  %v474_v33 = vpop.permute.xlu0 %473  ;;  %v1766_v34 = vld [vmem:[#allocation4 + $0x1c] ss:$12 sps:$4 sm:$0xff]   ;;  %v1768_v35 = vld [vmem:[#allocation4 + $0x18] ss:$12 sps:$4 sm:$0xff]   ;;  %v1580_v26 = vld [vmem:[%s1999_s15 + $0x4] sm:$0xf] }
 0x13d   : >> { %471 = vst [vmem:[#allocation4 + $0xc] sm:$0x33] %v468_v31  ;;  %v478_v37 = vrot.slane %v476_v32, 4  ;;  %485 = vst.msk [vmem:[#allocation4 + $0x14] sm:$0xc] %vm458_vm6, %v476_v32  ;;  %v477_v39 = vrot.slane %v474_v33, 4  ;;  %632 = vmatprep.subr.bf16.mxu0 %v1766_v34 }
 0x13e   : >> { %633 = vmatpush1.bf16.msra.mxu0 %v1768_v35  ;;  %s1858_s15 = smov (%p404_p4), 20  }
 0x13f   : >> { %v479_v41 = vsel %vm451_vm3, %v477_v39, %v478_v37 }
 0x140   : >> { %v481_v42 = vsel %vm2241_vm13, %v474_v33, %v479_v41  ;;  %vm738_vm13 = vcmask 1047556  }
 0x141   : >> { %484 = vst [vmem:[#allocation4 + $0xc] sm:$0xcc] %v481_v42 }
 0x144   : >> { %v1769_v44 = vld [vmem:[#allocation4 + $0x8] ss:$12 sps:$4 sm:$0xff]  }
 0x145   : >> { %1654 = vmatpush3.bf16.msra.mxu1 %v1769_v44 }
 0x146   : >> { %1659 = vmatprep.subr.bf16.mxu1 %v1833_v40 }
 0x148   : >> { %v1770_v46 = vld [vmem:[#allocation4 + $0x4] ss:$12 sps:$4 sm:$0xff]   ;;  %v1772_v47 = vld [vmem:[#allocation4] ss:$12 sps:$4 sm:$0xff]   ;;  %1656 = vmatmul.mubr.msk.bf16.vlgmr.msra.gmra.mxu1 %vm2240_vm14, %v411_v45 }
 0x149   : >> { %634 = vmatprep.subr.bf16.mxu0 %v1770_v46  ;;  %1665 = vmatprep.mubr.msk.bf16.mxu1 %vm1841_vm1, %v1833_v40  ;;  %v564_v55 = vpop.permute.xlu0 %563  ;;  %vm2244_vm1 = vcmp.eq.s32.totalorder %v2049_v59, 1 }
 0x14a   : >> { %635 = vmatpush1.bf16.msra.mxu0 %v1772_v47 }
 0x14d   : >> { %1593 = vmatmul.mubr.msk.bf16.vlgmr.msra.gmra.mxu0 %vm2240_vm14, %v411_v45  ;;  %vm737_vm14 = vcmask 1043608  }
 0x14e   : >> { %960 = vmatprep.mubr.bf16.mxu0 %v1840_v43 }
 0x208   : >> { %v695_v50 = vpop.f32.mrf.mxu1 }
 0x209   : >> { %v696_v5 = vadd.f32 %v695_v50, %v564_v55 }
 0x20a   : >> { %v1657_v54 = vpop.f32.mrf.mxu1 }
 0x20b   : >> { %v703_v11 = vmax.f32 %v696_v5, 0.0 }
 0x20c   : >> { %v698_v56 = vpop.f32.mrf.mxu1 }
 0x20d   : >> { %v654_v57 = vpop.f32.mrf.mxu0  ;;  %v722_v12 = vsel %vm719_vm2, %v703_v11, 0.0 }
 0x20e   : >> { %v655_v60 = vadd.f32 %v654_v57, %v564_v55  ;;  %v1658_v61 = vpop.f32.mrf.mxu1 }
 0x20f   : >> { %v656_v62 = vpop.f32.mrf.mxu0 }
 0x210   : >> { %v701_v1 = vmax.f32 %v655_v60, 0.0  ;;  %v657_v3 = vadd.f32 %v656_v62, %v564_v55 }
 0x211   : >> { %v658_v4 = vpop.f32.mrf.mxu0 }
 0x212   : >> { %v702_v43 = vmax.f32 %v657_v3, 0.0  ;;  %v720_v8 = vsel %vm2243_vm15, %v701_v1, 0.0  ;;  %vm2064_vm15 = vmor %vm738_vm13, %vm737_vm14  ;;  %vm2249_vm13 = vcmask 1039360   ;;  %vm2250_vm14 = vcmask 900096  }
 0x213   : >> { %v659_v6 = vpop.f32.mrf.mxu0 }
 0x214   : >> { %v721_v9 = vsel %vm2244_vm1, %v702_v43, 0.0  ;;  %vm741_vm1 = vcmask 412672  }
 0x215   : >> { %v726_v10 = vcombine.low %v720_v8, %v721_v9 }
 0x217   : >> { %727 = vrot.lane.b32.xlu1 %v726_v10, %s1842_s20 }
 0x21b   : >> { %729 = vrot.lane.b32.xlu1 %v722_v12, %s1842_s20 }
 0x289   : >> { %v728_v13 = vpop.permute.xlu1 %727 }
 0x28a   : >> { %v731_v15 = vrot.slane %v728_v13, 4 }
 0x28c   : >> { %v733_v16 = vsel %vm732_vm11, %v731_v15, %v728_v13 }
 0x28d   : >> { %740 = vst.msk [vmem:[#allocation3] sm:$0xff] %vm2064_vm15, %v733_v16  ;;  %v730_v17 = vpop.permute.xlu1 %729 }
 0x28e   : >> { %v734_v18 = vsel %vm732_vm11, %v731_v15, %v730_v17 }
 0x28f   : >> { %742 = vst.msk [vmem:[#allocation3 + $0x8] sm:$0xf] %vm741_vm1, %v734_v18 }
 0x294   : >> { %v743_v19 = vld [vmem:[#allocation3] sm:$0xff] }
 0x295   : >> { %v746_v20 = vcombine.high %v743_v19, %v743_v19 }
 0x296   : >> { %v744_v21 = vld [vmem:[#allocation3 + $0x8] sm:$0xf] }
 0x297   : >> { %v1633_v22 = vpack.c.bf16 %v746_v20, %v743_v19  ;;  %v1634_v23 = vpack.c.bf16 %v744_v21, %v744_v21 }
 0x299   : >> { %849 = vrot.lane.b32.xlu0 %v1633_v22, %s1832_s28  ;;  %761 = vst [vmem:[#allocation4] sm:$0x33] %v1633_v22  ;;  %851 = vrot.lane.b32.xlu1 %v1634_v23, %s1832_s28  ;;  %762 = vst.msk [vmem:[#allocation4 + $0x8] sm:$0x3] %vm441_vm0, %v1634_v23  ;;  %v763_v24 = vrot.slane %v1633_v22, 6  ;;  %v764_v25 = vrot.slane %v1634_v23, 6 }
 0x29a   : > { %s1848_s28 = smov (%p404_p4), 127  }
 0x29d   : >> { %801 = vrot.lane.b32.xlu0 %v1633_v22, %s1831_s27  ;;  %803 = vrot.lane.b32.xlu1 %v1634_v23, %s1831_s27 }
 0x2a1   : >> { %825 = vrot.lane.b32.xlu0 %v1633_v22, %s1835_s7  ;;  %827 = vrot.lane.b32.xlu1 %v1634_v23, %s1835_s7  ;;  %s1851_s7 = smov (%p404_p4), 110  }
 0x2a5   : >> { %777 = vrot.lane.b32.xlu0 %v1633_v22, %s1838_s10  ;;  %779 = vrot.lane.b32.xlu1 %v1634_v23, %s1838_s10  ;;  %s1853_s10 = smov (%p404_p4), 16  }
 0x2a9   : >> { %813 = vrot.lane.b32.xlu0 %v763_v24, %s1834_s30  ;;  %815 = vrot.lane.b32.xlu1 %v764_v25, %s1834_s30  ;;  %s1849_s30 = smov (%p404_p4), 126  }
 0x2ad   : >> { %837 = vrot.lane.b32.xlu0 %v763_v24, %s1836_s8  ;;  %839 = vrot.lane.b32.xlu1 %v764_v25, %s1836_s8  ;;  %s1868_s8 = smov (%p404_p4), 120  }
 0x2b1   : >> { %765 = vrot.lane.b32.xlu0 %v763_v24, %s1837_s9  ;;  %767 = vrot.lane.b32.xlu1 %v764_v25, %s1837_s9  ;;  %s1869_s9 = smov (%p404_p4), 112  }
 0x2b5   : >> { %789 = vrot.lane.b32.xlu0 %v763_v24, %s1839_s11  ;;  %791 = vrot.lane.b32.xlu1 %v764_v25, %s1839_s11  ;;  %s1854_s11 = smov (%p404_p4), 18  }
 0x2b9   : >> { %873 = vperm.xlu0 %1761, %v1580_v26   ;;  %1017 = vrot.lane.b32.xlu1 %v1965_v36, %s1831_s27 }
 0x2bd   : >> { %1021 = vrot.lane.b32.xlu1 %v1010_v27, %s1831_s27  ;;  %1019 = vrot.lane.b32.xlu0 %v1969_v38, %s1831_s27  ;;  %s1847_s27 = smov (%p404_p4), 91  }
 0x2be   : > { %1785 = vset.pattern.permute.xlu0 (%p404_p4), %v1852_v2 }
 0x30b   : >> { %v850_v28 = vpop.permute.xlu0 %849  ;;  %v852_v29 = vpop.permute.xlu1 %851 }
 0x30c   : >> { %v853_v30 = vrot.slane %v850_v28, 4  ;;  %v854_v31 = vrot.slane %v852_v29, 4  ;;  %860 = vst.msk [vmem:[#allocation4 + $0x38] sm:$0x3] %vm441_vm0, %v852_v29  ;;  %v1577_v29 = vld [vmem:[%s2035_s19 + $0x2] sm:$0x3] }
 0x30d   : > { %s1863_s19 = smov (%p404_p4), 8  }
 0x30e   : >> { %v855_v32 = vsel %vm451_vm3, %v853_v30, %v854_v31 }
 0x30f   : >> { %v856_v33 = vsel %vm545_vm5, %v850_v28, %v855_v32  ;;  %v802_v34 = vpop.permute.xlu0 %801  ;;  %v804_v35 = vpop.permute.xlu1 %803 }
 0x310   : >> { %859 = vst [vmem:[#allocation4 + $0x30] sm:$0x33] %v856_v33  ;;  %v805_v36 = vrot.slane %v802_v34, 4  ;;  %v806_v37 = vrot.slane %v804_v35, 4  ;;  %812 = vst.msk [vmem:[#allocation4 + $0x20] sm:$0x3] %vm441_vm0, %v804_v35 }
 0x312   : >> { %v807_v39 = vsel %vm451_vm3, %v805_v36, %v806_v37 }
 0x313   : >> { %v808_v38 = vsel %vm493_vm4, %v802_v34, %v807_v39  ;;  %v826_v41 = vpop.permute.xlu0 %825  ;;  %v828_v42 = vpop.permute.xlu1 %827  ;;  %v1774_v44 = vld [vmem:[#allocation4 + $0x38] ss:$0 sps:$4 sm:$0x33]  }
 0x314   : >> { %811 = vst [vmem:[#allocation4 + $0x18] sm:$0x33] %v808_v38  ;;  %v829_v45 = vrot.slane %v826_v41, 4  ;;  %v830_v46 = vrot.slane %v828_v42, 4  ;;  %836 = vst.msk [vmem:[#allocation4 + $0x2c] sm:$0x3] %vm441_vm0, %v828_v42 }
 0x315   : >> { %v926_v47 = vsel %vm610_vm7, %v1774_v44, 0 }
 0x316   : >> { %v831_v48 = vsel %vm451_vm3, %v829_v45, %v830_v46  ;;  %1660 = vmatpush3.bf16.msra.mxu1 %v926_v47 }
 0x317   : >> { %v832_v49 = vsel %vm519_vm9, %v826_v41, %v831_v48  ;;  %v778_v50 = vpop.permute.xlu0 %777  ;;  %v780_v51 = vpop.permute.xlu1 %779  ;;  %v869_v52 = vld [vmem:[#allocation4 + $0x30] sm:$0x33]  ;;  %1661 = vmatprep.subr.bf16.mxu1 %v1833_v40 }
 0x318   : >> { %835 = vst [vmem:[#allocation4 + $0x24] sm:$0x33] %v832_v49  ;;  %v781_v53 = vrot.slane %v778_v50, 4  ;;  %v782_v54 = vrot.slane %v780_v51, 4  ;;  %788 = vst.msk [vmem:[#allocation4 + $0x14] sm:$0x3] %vm441_vm0, %v780_v51  ;;  %v1604_v55 = vcombine.high %v869_v52, %v869_v52  ;;  %v1603_v56 = vcombine.low %v869_v52, %v869_v52 }
 0x31a   : >> { %v783_v57 = vsel %vm451_vm3, %v781_v53, %v782_v54  ;;  %1606 = vmatprep.subr.msk.bf16.mxu0 %vm610_vm7, %v1604_v55  ;;  %v920_v60 = vsel %vm610_vm7, %v1603_v56, 0 }
 0x31b   : >> { %v784_v61 = vsel %vm2245_vm12, %v778_v50, %v783_v57  ;;  %v814_v62 = vpop.permute.xlu0 %813  ;;  %939 = vmatpush1.bf16.msra.mxu0 %v920_v60  ;;  %v816_v63 = vpop.permute.xlu1 %815 }
 0x31c   : >> { %787 = vst [vmem:[#allocation4 + $0xc] sm:$0x33] %v784_v61  ;;  %v817_v1 = vrot.slane %v814_v62, 4  ;;  %v818_v3 = vrot.slane %v816_v63, 4  ;;  %824 = vst.msk [vmem:[#allocation4 + $0x20] sm:$0xc] %vm458_vm6, %v816_v63 }
 0x31e   : >> { %v819_v4 = vsel %vm451_vm3, %v817_v1, %v818_v3 }
 0x31f   : >> { %v820_v43 = vsel %vm506_vm8, %v814_v62, %v819_v4  ;;  %v838_v5 = vpop.permute.xlu0 %837  ;;  %v840_v6 = vpop.permute.xlu1 %839 }
 0x320   : >> { %823 = vst [vmem:[#allocation4 + $0x18] sm:$0xcc] %v820_v43  ;;  %v841_v8 = vrot.slane %v838_v5, 4  ;;  %v842_v9 = vrot.slane %v840_v6, 4  ;;  %848 = vst.msk [vmem:[#allocation4 + $0x2c] sm:$0xc] %vm458_vm6, %v840_v6 }
 0x322   : >> { %v843_v10 = vsel %vm451_vm3, %v841_v8, %v842_v9  ;;  %v1051_v8 = vld [vmem:[%s2238_s5] sm:$0xf] (%p404_p4) }
 0x323   : >> { %v844_v11 = vsel %vm532_vm10, %v838_v5, %v843_v10  ;;  %v766_v12 = vpop.permute.xlu0 %765  ;;  %v768_v13 = vpop.permute.xlu1 %767  ;;  %v2159_v9 = vld [vmem:[%s1928_s26] sm:$0xff] (%p404_p4)  ;;  %s1859_s26 = smov (%p404_p4), 14  }
 0x324   : >> { %847 = vst [vmem:[#allocation4 + $0x24] sm:$0xcc] %v844_v11  ;;  %v769_v15 = vrot.slane %v766_v12, 4  ;;  %v770_v16 = vrot.slane %v768_v13, 4  ;;  %776 = vst.msk [vmem:[#allocation4 + $0x8] sm:$0xc] %vm458_vm6, %v768_v13  ;;  %v1412_v10 = vcombine.high (%p404_p4), %v2159_v9, %v2159_v9 }
 0x326   : >> { %v771_v17 = vsel %vm451_vm3, %v769_v15, %v770_v16 }
 0x327   : >> { %v772_v18 = vsel %vm2249_vm13, %v766_v12, %v771_v17  ;;  %v790_v19 = vpop.permute.xlu0 %789  ;;  %v792_v20 = vpop.permute.xlu1 %791  ;;  %v1777_v21 = vld [vmem:[#allocation4 + $0x20] ss:$12 sps:$4 sm:$0xff]   ;;  %vm2251_vm13 = vcmask 293888  }
 0x328   : >> { %775 = vst [vmem:[#allocation4] sm:$0xcc] %v772_v18  ;;  %v793_v22 = vrot.slane %v790_v19, 4  ;;  %v794_v23 = vrot.slane %v792_v20, 4  ;;  %800 = vst.msk [vmem:[#allocation4 + $0x14] sm:$0xc] %vm458_vm6, %v792_v20  ;;  %1662 = vmatpush3.bf16.msra.mxu1 %v1777_v21 }
 0x329   : >> { %1663 = vmatprep.subr.bf16.mxu1 %v1833_v40  ;;  %vm2252_vm12 = vmmov %vm2251_vm13 }
 0x32a   : >> { %v795_v24 = vsel %vm451_vm3, %v793_v22, %v794_v23 }
 0x32b   : >> { %v796_v25 = vsel %vm2250_vm14, %v790_v19, %v795_v24  ;;  %v1778_v26 = vld [vmem:[#allocation4 + $0x18] ss:$12 sps:$4 sm:$0xff]   ;;  %v1780_v27 = vld [vmem:[#allocation4 + $0x1c] ss:$12 sps:$4 sm:$0xff]   ;;  %v1018_v32 = vpop.permute.xlu1 %1017  ;;  %vm2254_vm14 = vcmp.eq.s32.totalorder %v2049_v59, 1 }
 0x32c   : >> { %799 = vst [vmem:[#allocation4 + $0xc] sm:$0xcc] %v796_v25  ;;  %940 = vmatprep.subr.bf16.mxu0 %v1780_v27 }
 0x32d   : >> { %941 = vmatpush1.bf16.msra.mxu0 %v1778_v26 }
 0x32f   : >> { %v1781_v28 = vld [vmem:[#allocation4 + $0x8] ss:$12 sps:$4 sm:$0xff]   ;;  %v1022_v35 = vpop.permute.xlu1 %1021 }
 0x330   : >> { %1664 = vmatpush3.bf16.msra.mxu1 %v1781_v28 }
 0x331   : > { %1669 = vmatprep.subr.bf16.mxu1 (%p404_p4), %v1814_v0 }
 0x333   : >> { %v1782_v30 = vld [vmem:[#allocation4] ss:$12 sps:$4 sm:$0xff]   ;;  %v1784_v31 = vld [vmem:[#allocation4 + $0x4] ss:$12 sps:$4 sm:$0xff]   ;;  %1666 = vmatmul.mubr.msk.bf16.vlgmr.msra.gmra.mxu1 %vm2251_vm13, %v1577_v29  ;;  %vm1407_vm13 = vcmask (%p404_p4), 932864  }
 0x334   : >> { %942 = vmatprep.subr.bf16.mxu0 %v1784_v31  ;;  %v874_v40 = vpop.permute.xlu0 %873 }
 0x335   : >> { %943 = vmatpush1.bf16.msra.mxu0 %v1782_v30 }
 0x338   : >> { %1607 = vmatmul.mubr.msk.bf16.vlgmr.msra.gmra.mxu0 %vm2252_vm12, %v1577_v29  ;;  %v1020_v44 = vpop.permute.xlu0 %1019  ;;  %vm2253_vm12 = vcmp.eq.s32.totalorder %v2047_v58, 1 }
 0x339   : >> { %v1024_v50 = vsel %vm493_vm4, %v1018_v32, %v1020_v44  ;;  %v1025_v51 = vsel %vm493_vm4, %v1020_v44, %v1022_v35  ;;  %1282 = vmatprep.mubr.bf16.mxu0 (%p404_p4), %v1852_v2 }
 0x3f3   : >> { %v1003_v33 = vpop.f32.mrf.mxu1 }
 0x3f4   : >> { %v1004_v34 = vadd.f32 %v1003_v33, %v874_v40 }
 0x3f5   : >> { %v1667_v36 = vpop.f32.mrf.mxu1 }
 0x3f6   : >> { %v1013_v37 = vmul.f32 0.1, %v1004_v34 }
 0x3f7   : >> { %v1006_v39 = vpop.f32.mrf.mxu1 }
 0x3f8   : >> { %v1031_v38 = vadd.f32 %v1022_v35, %v1013_v37  ;;  %v962_v41 = vpop.f32.mrf.mxu0 }
 0x3f9   : >> { %v963_v42 = vadd.f32 %v962_v41, %v874_v40  ;;  %v1668_v45 = vpop.f32.mrf.mxu1 }
 0x3fa   : >> { %v964_v46 = vpop.f32.mrf.mxu0  ;;  %v1034_v47 = vsel %vm719_vm2, %v1031_v38, 0.0  ;;  %vm1850_vm2 = vmmov (%p404_p4), 0  }
 0x3fb   : >> { %v1011_v48 = vmul.f32 0.1, %v963_v42  ;;  %v965_v49 = vadd.f32 %v964_v46, %v874_v40  ;;  %1041 = vrot.lane.b32.xlu1 %v1034_v47, %s1842_s20  ;;  %1675 = vmatprep.mubr.msk.bf16.mxu1 (%p404_p4), %vm1850_vm2, %v1814_v0 }
 0x3fc   : >> { %v966_v52 = vpop.f32.mrf.mxu0 }
 0x3fd   : >> { %v1029_v53 = vadd.f32 %v1024_v50, %v1011_v48  ;;  %v1012_v54 = vmul.f32 0.1, %v965_v49 }
 0x3fe   : >> { %v967_v55 = vpop.f32.mrf.mxu0 }
 0x3ff   : >> { %v1030_v56 = vadd.f32 %v1025_v51, %v1012_v54  ;;  %v1032_v57 = vsel %vm2253_vm12, %v1029_v53, 0.0  ;;  %vm1394_vm12 = vcmask (%p404_p4), 913152  }
 0x401   : >> { %v1033_v7 = vsel %vm2254_vm14, %v1030_v56, 0.0  ;;  %vm1410_vm14 = vcmask (%p404_p4), 1044352  }
 0x402   : >> { %v1038_v60 = vcombine.low %v1032_v57, %v1033_v7 }
 0x404   : >> { %1039 = vrot.lane.b32.xlu0 %v1038_v60, %s1842_s20  ;;  %s1864_s20 = smov (%p404_p4), 26  }
 0x46d   : >> { %v1042_v63 = vpop.permute.xlu1 %1041 }
 0x476   : >> { %v1040_v61 = vpop.permute.xlu0 %1039 }
 0x477   : >> { %v1043_v62 = vrot.slane %v1040_v61, 4  ;;  %406 = sbr.rel (!%p404_p4) target bundleno = 165 (0xa5), region = 85 }
 0x479   : >> { %v1044_v1 = vsel %vm732_vm11, %v1043_v62, %v1040_v61  ;;  %v1045_v3 = vsel %vm732_vm11, %v1043_v62, %v1042_v63  ;;  %vm1374_vm11 = vcmask (%p404_p4), 650752  }
 0x47a   : >> { %1048 = vst.msk [vmem:[#allocation2] sm:$0xff] %vm2064_vm15, %v1044_v1  ;;  %vm1384_vm15 = vcmask (%p404_p4), 781952  }
 0x47b   : >> { %1049 = vst.msk [vmem:[#allocation2 + $0x8] sm:$0xf] %vm741_vm1, %v1045_v3  ;;  %vm1478_vm1 = vcmask (%p404_p4), 818176  }
 0x481   : > { %v1052_v59 = vld [vmem:[#allocation2] sm:$0xff] }
 0x482   : > { %v1053_v58 = vld [vmem:[#allocation2 + $0x8] sm:$0xf]  ;;  %v1055_v43 = vcombine.high %v1052_v59, %v1052_v59 }
 0x483   : > { %v1636_v4 = vpack.c.bf16 %v1053_v58, %v1053_v58 }
 0x484   : > { %v1635_v14 = vpack.c.bf16 %v1055_v43, %v1052_v59 }
 0x485   : > { %1118 = vrot.lane.b32.xlu1 %v1636_v4, %s1843_s22  ;;  %1072 = vst.msk [vmem:[#allocation4 + $0x8] sm:$0x3] %vm441_vm0, %v1636_v4  ;;  %1170 = vrot.lane.b32.xlu0 %v1636_v4, %s1844_s23  ;;  %v1074_v5 = vrot.slane %v1636_v4, 6 }
 0x486   : > { %1070 = vst [vmem:[#allocation4] sm:$0x33] %v1635_v14  ;;  %v1073_v6 = vrot.slane %v1635_v14, 6 }
 0x489   : > { %1116 = vrot.lane.b32.xlu1 %v1635_v14, %s1843_s22  ;;  %1168 = vrot.lane.b32.xlu0 %v1635_v14, %s1844_s23  ;;  %s1865_s22 = smov 10   ;;  %s1866_s23 = smov 30  }
 0x48d   : > { %1131 = vrot.lane.b32.xlu1 %v1074_v5, %s1845_s24  ;;  %1129 = vrot.lane.b32.xlu0 %v1073_v6, %s1845_s24 }
 0x491   : > { %1144 = vrot.lane.b32.xlu1 %v1636_v4, %s1846_s25  ;;  %1142 = vrot.lane.b32.xlu0 %v1635_v14, %s1846_s25  ;;  %s1867_s25 = smov 12  }
 0x495   : > { %1157 = vrot.lane.b32.xlu1 %v1074_v5, %s1847_s27  ;;  %1155 = vrot.lane.b32.xlu0 %v1073_v6, %s1847_s27 }
 0x499   : > { %1077 = vrot.lane.b32.xlu1 %v1074_v5, %s1848_s28  ;;  %1075 = vrot.lane.b32.xlu0 %v1073_v6, %s1848_s28 }
 0x49d   : > { %1092 = vrot.lane.b32.xlu1 %v1636_v4, %s1849_s30  ;;  %1090 = vrot.lane.b32.xlu0 %v1635_v14, %s1849_s30 }
 0x4a1   : > { %1105 = vrot.lane.b32.xlu1 %v1074_v5, %s1851_s7  ;;  %1103 = vrot.lane.b32.xlu0 %v1073_v6, %s1851_s7 }
 0x4a5   : > { %1193 = vperm.xlu0 %1785, %v1051_v8   ;;  %1413 = vrot.lane.b32.xlu1 %v1412_v10, %s1853_s10  ;;  %s1870_s10 = smov 124  }
 0x4a9   : > { %1422 = vrot.lane.b32.xlu0 %v1412_v10, %s1854_s11  ;;  %1336 = vrot.lane.b32.xlu1 %v2159_v9, %s1855_s12  ;;  %s1871_s11 = smov 122   ;;  %s1873_s12 = smov 106  }
 0x4ad   : > { %1346 = vrot.lane.b32.xlu0 %v2159_v9, %s1856_s13  ;;  %1467 = vrot.lane.b32.xlu1 %v1412_v10, %s1857_s14  ;;  %s1874_s13 = smov 100   ;;  %s1876_s14 = smov 114  }
 0x4b1   : > { %1431 = vrot.lane.b32.xlu0 %v1412_v10, %s1858_s15  ;;  %1396 = vrot.lane.b32.xlu1 %v2159_v9, %s1859_s26  ;;  %s1878_s15 = smov 116   ;;  %s1879_s26 = smov 98  }
 0x4b5   : > { %1440 = vrot.lane.b32.xlu0 %v1412_v10, %s1860_s16  ;;  %1356 = vrot.lane.b32.xlu1 %v2159_v9, %s1861_s17 }
 0x4b9   : > { %1449 = vrot.lane.b32.xlu0 %v1412_v10, %s1862_s18  ;;  %1366 = vrot.lane.b32.xlu1 %v2159_v9, %s1863_s19 }
 0x4bd   : > { %1458 = vrot.lane.b32.xlu0 %v1412_v10, %s1864_s20  ;;  %1376 = vrot.lane.b32.xlu1 %v2159_v9, %s1865_s22 }
 0x4c1   : > { %1482 = vrot.lane.b32.xlu0 %v1412_v10, %s1866_s23  ;;  %1386 = vrot.lane.b32.xlu1 %v2159_v9, %s1867_s25 }
 0x4f7   : > { %v1119_v11 = vpop.permute.xlu1 %1118  ;;  %v1171_v12 = vpop.permute.xlu0 %1170 }
 0x4f8   : > { %1128 = vst.msk [vmem:[#allocation4 + $0x20] sm:$0x3] %vm441_vm0, %v1119_v11  ;;  %1180 = vst.msk [vmem:[#allocation4 + $0x38] sm:$0x3] %vm441_vm0, %v1171_v12  ;;  %v1121_v16 = vrot.slane %v1119_v11, 4  ;;  %v1173_v17 = vrot.slane %v1171_v12, 4 }
 0x4fb   : > { %v1117_v13 = vpop.permute.xlu1 %1116  ;;  %v1169_v15 = vpop.permute.xlu0 %1168 }
 0x4fc   : > { %v1120_v18 = vrot.slane %v1117_v13, 4  ;;  %v1172_v19 = vrot.slane %v1169_v15, 4 }
 0x4fe   : > { %v1122_v20 = vsel %vm451_vm3, %v1120_v18, %v1121_v16  ;;  %v1174_v21 = vsel %vm451_vm3, %v1172_v19, %v1173_v17 }
 0x4ff   : > { %v1124_v22 = vsel %vm493_vm4, %v1117_v13, %v1122_v20  ;;  %v1176_v23 = vsel %vm545_vm5, %v1169_v15, %v1174_v21  ;;  %v1132_v24 = vpop.permute.xlu1 %1131  ;;  %v1130_v25 = vpop.permute.xlu0 %1129  ;;  %v1787_v26 = vld [vmem:[#allocation4 + $0x38] ss:$0 sps:$4 sm:$0x33]   ;;  %vm2255_vm4 = vcmask 1039360   ;;  %vm2256_vm5 = vcmask 1031168  }
 0x500   : > { %1127 = vst [vmem:[#allocation4 + $0x18] sm:$0x33] %v1124_v22  ;;  %1179 = vst [vmem:[#allocation4 + $0x30] sm:$0x33] %v1176_v23  ;;  %v1134_v27 = vrot.slane %v1132_v24, 4  ;;  %v1133_v28 = vrot.slane %v1130_v25, 4 }
 0x501   : > { %1141 = vst.msk [vmem:[#allocation4 + $0x20] sm:$0xc] %vm458_vm6, %v1132_v24  ;;  %v1248_v29 = vsel %vm610_vm7, %v1787_v26, 0 }
 0x502   : > { %v1135_v30 = vsel %vm451_vm3, %v1133_v28, %v1134_v27  ;;  %1670 = vmatpush3.bf16.msra.mxu1 %v1248_v29 }
 0x503   : > { %v1137_v31 = vsel %vm506_vm8, %v1130_v25, %v1135_v30  ;;  %v1145_v32 = vpop.permute.xlu1 %1144  ;;  %v1143_v40 = vpop.permute.xlu0 %1142  ;;  %1671 = vmatprep.subr.bf16.mxu1 %v1814_v0  ;;  %vm1344_vm8 = vcmask 257152  }
 0x504   : > { %1140 = vst [vmem:[#allocation4 + $0x18] sm:$0xcc] %v1137_v31  ;;  %v1147_v33 = vrot.slane %v1145_v32, 4  ;;  %1154 = vst.msk [vmem:[#allocation4 + $0x2c] sm:$0x3] %vm441_vm0, %v1145_v32  ;;  %v1146_v34 = vrot.slane %v1143_v40, 4 }
 0x506   : > { %v1148_v35 = vsel %vm451_vm3, %v1146_v34, %v1147_v33 }
 0x507   : > { %v1150_v36 = vsel %vm519_vm9, %v1143_v40, %v1148_v35  ;;  %v1158_v37 = vpop.permute.xlu1 %1157  ;;  %v1156_v39 = vpop.permute.xlu0 %1155  ;;  %v1189_v38 = vld [vmem:[#allocation4 + $0x30] sm:$0x33]  ;;  %vm1354_vm9 = vcmask 388352  }
 0x508   : > { %1153 = vst [vmem:[#allocation4 + $0x24] sm:$0x33] %v1150_v36  ;;  %v1160_v41 = vrot.slane %v1158_v37, 4  ;;  %1167 = vst.msk [vmem:[#allocation4 + $0x2c] sm:$0xc] %vm458_vm6, %v1158_v37  ;;  %v1159_v42 = vrot.slane %v1156_v39, 4  ;;  %v1618_v44 = vcombine.high %v1189_v38, %v1189_v38  ;;  %v1617_v45 = vcombine.low %v1189_v38, %v1189_v38 }
 0x50a   : > { %v1161_v46 = vsel %vm451_vm3, %v1159_v42, %v1160_v41  ;;  %1620 = vmatprep.subr.msk.bf16.mxu0 %vm610_vm7, %v1618_v44  ;;  %v1242_v47 = vsel %vm610_vm7, %v1617_v45, 0  ;;  %vm2258_vm7 = vcmask 293888  }
 0x50b   : > { %v1163_v48 = vsel %vm532_vm10, %v1156_v39, %v1161_v46  ;;  %v1078_v49 = vpop.permute.xlu1 %1077  ;;  %1261 = vmatpush1.bf16.msra.mxu0 %v1242_v47  ;;  %v1076_v50 = vpop.permute.xlu0 %1075  ;;  %vm1364_vm10 = vcmask 519552  }
 0x50c   : > { %1166 = vst [vmem:[#allocation4 + $0x24] sm:$0xcc] %v1163_v48  ;;  %v1080_v51 = vrot.slane %v1078_v49, 4  ;;  %1089 = vst.msk [vmem:[#allocation4 + $0x8] sm:$0xc] %vm458_vm6, %v1078_v49  ;;  %v1079_v52 = vrot.slane %v1076_v50, 4 }
 0x50e   : > { %v1082_v53 = vsel %vm451_vm3, %v1079_v52, %v1080_v51 }
 0x50f   : > { %v1084_v54 = vsel %vm2255_vm4, %v1076_v50, %v1082_v53  ;;  %v1093_v55 = vpop.permute.xlu1 %1092  ;;  %v1091_v56 = vpop.permute.xlu0 %1090  ;;  %v1789_v57 = vld [vmem:[#allocation4 + $0x20] ss:$12 sps:$4 sm:$0xff]  }
 0x510   : > { %1087 = vst [vmem:[#allocation4] sm:$0xcc] %v1084_v54  ;;  %v1095_v7 = vrot.slane %v1093_v55, 4  ;;  %1102 = vst.msk [vmem:[#allocation4 + $0x14] sm:$0x3] %vm441_vm0, %v1093_v55  ;;  %v1094_v60 = vrot.slane %v1091_v56, 4  ;;  %1672 = vmatpush3.bf16.msra.mxu1 %v1789_v57 }
 0x511   : > { %1673 = vmatprep.subr.bf16.mxu1 %v1814_v0  ;;  %vm2257_vm0 = vcmask 900096   ;;  %v1050_v0 = vld [vmem:[%s2237_s4] sm:$0x3] }
 0x512   : > { %v1096_v61 = vsel %vm451_vm3, %v1094_v60, %v1095_v7 }
 0x513   : > { %v1098_v62 = vsel %vm2256_vm5, %v1091_v56, %v1096_v61  ;;  %v1106_v63 = vpop.permute.xlu1 %1105  ;;  %v1104_v1 = vpop.permute.xlu0 %1103  ;;  %v1790_v3 = vld [vmem:[#allocation4 + $0x1c] ss:$12 sps:$4 sm:$0xff]   ;;  %v1792_v58 = vld [vmem:[#allocation4 + $0x18] ss:$12 sps:$4 sm:$0xff]  }
 0x514   : > { %1101 = vst [vmem:[#allocation4 + $0xc] sm:$0x33] %v1098_v62  ;;  %v1108_v59 = vrot.slane %v1106_v63, 4  ;;  %1115 = vst.msk [vmem:[#allocation4 + $0x14] sm:$0xc] %vm458_vm6, %v1106_v63  ;;  %v1107_v4 = vrot.slane %v1104_v1, 4  ;;  %1262 = vmatprep.subr.bf16.mxu0 %v1790_v3 }
 0x515   : > { %1263 = vmatpush1.bf16.msra.mxu0 %v1792_v58  ;;  %vm2259_vm6 = vmmov %vm2258_vm7 }
 0x516   : > { %v1109_v43 = vsel %vm451_vm3, %v1107_v4, %v1108_v59  ;;  %vm1333_vm3 = vcmask 125952  }
 0x517   : > { %v1111_v14 = vsel %vm2257_vm0, %v1104_v1, %v1109_v43  ;;  %v1414_v8 = vpop.permute.xlu1 %1413 }
 0x518   : > { %1114 = vst [vmem:[#allocation4 + $0xc] sm:$0xcc] %v1111_v14 }
 0x51b   : > { %v1793_v5 = vld [vmem:[#allocation4 + $0x8] ss:$12 sps:$4 sm:$0xff]   ;;  %v1337_v10 = vpop.permute.xlu1 %1336 }
 0x51c   : > { %1674 = vmatpush3.bf16.msra.mxu1 %v1793_v5 }
 0x51f   : > { %v1794_v6 = vld [vmem:[#allocation4 + $0x4] ss:$12 sps:$4 sm:$0xff]   ;;  %v1796_v2 = vld [vmem:[#allocation4] ss:$12 sps:$4 sm:$0xff]   ;;  %1676 = vmatmul.mubr.msk.bf16.vlgmr.msra.gmra.mxu1 %vm2258_vm7, %v1050_v0  ;;  %v1468_v11 = vpop.permute.xlu1 %1467 }
 0x520   : > { %1264 = vmatprep.subr.bf16.mxu0 %v1794_v6  ;;  %v1194_v12 = vpop.permute.xlu0 %1193 }
 0x521   : > { %1265 = vmatpush1.bf16.msra.mxu0 %v1796_v2 }
 0x523   : > { %v1397_v13 = vpop.permute.xlu1 %1396 }
 0x524   : > { %1621 = vmatmul.mubr.msk.bf16.vlgmr.msra.gmra.mxu0 %vm2259_vm6, %v1050_v0  ;;  %v1423_v15 = vpop.permute.xlu0 %1422 }
 0x527   : > { %v1357_v17 = vpop.permute.xlu1 %1356 }
 0x528   : > { %v1347_v19 = vpop.permute.xlu0 %1346 }
 0x52b   : > { %v1367_v24 = vpop.permute.xlu1 %1366 }
 0x52c   : > { %v1432_v29 = vpop.permute.xlu0 %1431 }
 0x52f   : > { %v1377_v39 = vpop.permute.xlu1 %1376 }
 0x530   : > { %v1441_v34 = vpop.permute.xlu0 %1440 }
 0x533   : > { %v1387_v52 = vpop.permute.xlu1 %1386 }
 0x534   : > { %v1450_v44 = vpop.permute.xlu0 %1449 }
 0x538   : > { %v1459_v49 = vpop.permute.xlu0 %1458 }
 0x53c   : > { %v1483_v55 = vpop.permute.xlu0 %1482 }
 0x5df   : > { %v1325_v16 = vpop.f32.mrf.mxu1 }
 0x5e0   : > { %v1326_v37 = vadd.f32 %v1325_v16, %v1194_v12 }
 0x5e1   : > { %v1677_v18 = vpop.f32.mrf.mxu1 }
 0x5e2   : > { %v1485_v56 = vadd.f32 %v1483_v55, %v1326_v37 }
 0x5e3   : > { %v1328_v20 = vpop.f32.mrf.mxu1 }
 0x5e4   : > { %v1284_v21 = vpop.f32.mrf.mxu0 }
 0x5e5   : > { %v1285_v22 = vadd.f32 %v1284_v21, %v1194_v12  ;;  %v1678_v23 = vpop.f32.mrf.mxu1 }
 0x5e6   : > { %v1286_v25 = vpop.f32.mrf.mxu0 }
 0x5e7   : > { %v1287_v26 = vadd.f32 %v1286_v25, %v1194_v12  ;;  %v1369_v27 = vadd.f32 %v1367_v24, %v1285_v22  ;;  %v1339_v28 = vadd.f32 %v1337_v10, %v1285_v22  ;;  %v1349_v40 = vadd.f32 %v1347_v19, %v1285_v22 }
 0x5e8   : > { %v1288_v30 = vpop.f32.mrf.mxu0  ;;  %v1332_v33 = vadd.f32 %v2159_v9, %v1285_v22  ;;  %v1359_v36 = vadd.f32 %v1357_v17, %v1285_v22  ;;  %v1379_v41 = vadd.f32 %v1377_v39, %v1285_v22  ;;  %v1471_v9 = vadd.f32 %v1468_v11, %v1326_v37 }
 0x5e9   : > { %1371 = vrot.lane.b32.xlu1 %v1369_v27, %s1868_s8  ;;  %1341 = vrot.lane.b32.xlu0 %v1339_v28, %s1849_s30  ;;  %v1416_v32 = vadd.f32 %v1414_v8, %v1287_v26  ;;  %v1425_v35 = vadd.f32 %v1423_v15, %v1287_v26  ;;  %v1434_v38 = vadd.f32 %v1432_v29, %v1287_v26  ;;  %s1872_s30 = smov 118  }
 0x5ea   : > { %v1289_v31 = vpop.f32.mrf.mxu0  ;;  %1334 = vst.msk [vmem:[%s1933_s29] sm:$0xf] %vm1333_vm3, %v1332_v33  ;;  %v1470_v42 = vadd.f32 %v1468_v11, %v1287_v26  ;;  %v1443_v45 = vadd.f32 %v1441_v34, %v1287_v26  ;;  %v1400_v47 = vadd.f32 %v1397_v13, %v1287_v26  ;;  %v1399_v48 = vadd.f32 %v1397_v13, %v1285_v22 }
 0x5eb   : > { %v1452_v50 = vadd.f32 %v1450_v44, %v1287_v26  ;;  %v1389_v53 = vadd.f32 %v1387_v52, %v1285_v22  ;;  %v1461_v54 = vadd.f32 %v1459_v49, %v1287_v26 }
 0x5ec   : > { %v1474_v46 = vcombine.low %v1470_v42, %v1471_v9  ;;  %v1403_v51 = vcombine.low %v1399_v48, %v1400_v47 }
 0x5ed   : > { %1418 = vrot.lane.b32.xlu1 %v1416_v32, %s1869_s9  ;;  %1351 = vrot.lane.b32.xlu0 %v1349_v40, %s1870_s10 }
 0x5f1   : > { %1427 = vrot.lane.b32.xlu1 %v1425_v35, %s1851_s7  ;;  %1361 = vrot.lane.b32.xlu0 %v1359_v36, %s1871_s11  ;;  %s1875_s7 = smov 104  }
 0x5f5   : > { %1436 = vrot.lane.b32.xlu1 %v1434_v38, %s1845_s24  ;;  %1381 = vrot.lane.b32.xlu0 %v1379_v41, %s1872_s30  ;;  %s1877_s24 = smov 102  }
 0x5f9   : > { %1445 = vrot.lane.b32.xlu1 %v1443_v45, %s1873_s12  ;;  %1475 = vrot.lane.b32.xlu0 %v1474_v46, %s1874_s13 }
 0x5fd   : > { %1454 = vrot.lane.b32.xlu1 %v1452_v50, %s1875_s7  ;;  %1404 = vrot.lane.b32.xlu0 %v1403_v51, %s1876_s14 }
 0x601   : > { %1463 = vrot.lane.b32.xlu1 %v1461_v54, %s1877_s24  ;;  %1391 = vrot.lane.b32.xlu0 %v1389_v53, %s1878_s15 }
 0x605   : > { %1487 = vrot.lane.b32.xlu1 %v1485_v56, %s1879_s26 }
 0x65b   : > { %v1372_v57 = vpop.permute.xlu1 %1371  ;;  %v1342_v7 = vpop.permute.xlu0 %1341 }
 0x65c   : > { %1345 = vst.msk [vmem:[%s1933_s29] sm:$0xf] %vm1344_vm8, %v1342_v7 }
 0x65f   : > { %v1419_v60 = vpop.permute.xlu1 %1418  ;;  %v1352_v61 = vpop.permute.xlu0 %1351 }
 0x660   : > { %1421 = vst.msk [vmem:[%s1933_s29 + $0x4] sm:$0xf] %vm1333_vm3, %v1419_v60 }
 0x661   : > { %1355 = vst.msk [vmem:[%s1933_s29] sm:$0xf] %vm1354_vm9, %v1352_v61 }
 0x663   : > { %v1428_v62 = vpop.permute.xlu1 %1427  ;;  %v1362_v63 = vpop.permute.xlu0 %1361 }
 0x664   : > { %1430 = vst.msk [vmem:[%s1933_s29 + $0x4] sm:$0xf] %vm1344_vm8, %v1428_v62 }
 0x665   : > { %1365 = vst.msk [vmem:[%s1933_s29] sm:$0xf] %vm1364_vm10, %v1362_v63 }
 0x666   : > { %1375 = vst.msk [vmem:[%s1933_s29] sm:$0xf] %vm1374_vm11, %v1372_v57 }
 0x667   : > { %v1437_v1 = vpop.permute.xlu1 %1436  ;;  %v1382_v3 = vpop.permute.xlu0 %1381 }
 0x668   : > { %1439 = vst.msk [vmem:[%s1933_s29 + $0x4] sm:$0xf] %vm1354_vm9, %v1437_v1 }
 0x669   : > { %1385 = vst.msk [vmem:[%s1933_s29] sm:$0xf] %vm1384_vm15, %v1382_v3 }
 0x66b   : > { %v1446_v58 = vpop.permute.xlu1 %1445  ;;  %v1476_v59 = vpop.permute.xlu0 %1475 }
 0x66c   : > { %1448 = vst.msk [vmem:[%s1933_s29 + $0x4] sm:$0xf] %vm1364_vm10, %v1446_v58  ;;  %v1477_v14 = vrot.slane %v1476_v59, 4 }
 0x66e   : > { %v1479_v2 = vsel %vm1478_vm1, %v1476_v59, %v1477_v14 }
 0x66f   : > { %v1455_v4 = vpop.permute.xlu1 %1454  ;;  %v1405_v43 = vpop.permute.xlu0 %1404 }
 0x670   : > { %1457 = vst.msk [vmem:[%s1933_s29 + $0x4] sm:$0xf] %vm1374_vm11, %v1455_v4  ;;  %v1406_v5 = vrot.slane %v1405_v43, 4 }
 0x672   : > { %v1408_v8 = vsel %vm1407_vm13, %v1405_v43, %v1406_v5 }
 0x673   : > { %v1464_v0 = vpop.permute.xlu1 %1463  ;;  %v1392_v6 = vpop.permute.xlu0 %1391 }
 0x674   : > { %1466 = vst.msk [vmem:[%s1933_s29 + $0x4] sm:$0xf] %vm1384_vm15, %v1464_v0 }
 0x675   : > { %1395 = vst.msk [vmem:[%s1933_s29] sm:$0xf] %vm1394_vm12, %v1392_v6  ;;  %1481 = vst.msk [vmem:[%s1933_s29 + $0x4] sm:$0xf] %vm1394_vm12, %v1479_v2 }
 0x676   : > { %1411 = vst.msk [vmem:[%s1933_s29] sm:$0xf] %vm1410_vm14, %v1408_v8 }
 0x677   : > { %v1488_v10 = vpop.permute.xlu1 %1487 }
 0x678   : > { %1490 = vst.msk [vmem:[%s1933_s29 + $0x4] sm:$0xf] %vm1410_vm14, %v1488_v10 }
 0x679 PF: > { %s16_s21 = sadd.s32 1, %s1808_s21  }
 0x67a   : > { %p13_p5 = scmp.ge.s32.totalorder %s16_s21, 4  }
 0x67c   :  { %15 = sbr.rel (!%p13_p5) target bundleno = 1 (0x1), region = 96 }

</bundles_post_ra>
